<compile_context>
chip_gen: v7x
topology: tpu7x:2x2x1
jax: 0.10.0
libtpu: 0.0.40
codegen_flags: <defaults>
</compile_context>

<pallas_src>
import jax
import jax.numpy as jnp
from jax.experimental import pallas as pl
from jax.experimental.pallas import tpu as pltpu

INPUT_SIZE = 784
NUM_CLASSES = 10
HIDDEN_SIZES = [512, 256, 256, 128]

IN_PAD = 896       # 784 padded up to a multiple of 128 (zeros, no semantic change)
OUT_PAD = 128      # 10 padded up to a lane-dense 128-wide head / output
MAX_TILE_B = 2048  # batch tile cap; multiple of 256 for clean MXU M passes


def _round_up(x, m):
    return ((x + m - 1) // m) * m


def _cdiv(a, b):
    return -(-a // b)


def _mlp_kernel(x_ref, *refs):
    """Fused MLP forward for one batch tile.

    refs = (w0, b0, w1, b1, ..., wL, bL, out_ref)
    Weights are bf16, biases f32; matmuls accumulate in f32 on the MXU,
    bias-add + ReLU run in f32, activations re-cast to bf16 between layers.
    Weights/biases have constant index_maps, so they are DMA'd into VMEM once
    per call and stay resident across batch-tile grid steps.
    """
    out_ref = refs[-1]
    param_refs = refs[:-1]
    n_layers = len(param_refs) // 2

    h = x_ref[...]                               # bf16 (tile_b, IN_PAD)
    for i in range(n_layers):
        w = param_refs[2 * i][...]               # bf16 (in, out)
        b = param_refs[2 * i + 1][...]           # f32  (1, out)
        acc = jnp.dot(h, w, preferred_element_type=jnp.float32) + b
        if i < n_layers - 1:                     # act_fn (ReLU) on all but last layer
            h = jnp.maximum(acc, 0.0).astype(jnp.bfloat16)
        else:
            h = acc                              # final logits stay f32 until store
    out_ref[...] = h.astype(out_ref.dtype)       # bf16, lane-dense unmasked store


def init_params(key, input_size=INPUT_SIZE, num_classes=NUM_CLASSES,
                hidden_sizes=HIDDEN_SIZES):
    """PyTorch-default-style init (uniform +-1/sqrt(fan_in)), then:
       - layer-0 weight zero-padded on K: 784 -> 896
       - final layer zero-padded on N: 10 -> 128 (weight and bias)
       - weights cast to bf16, biases kept f32."""
    sizes = [input_size] + list(hidden_sizes) + [num_classes]
    params = []
    for i in range(len(sizes) - 1):
        key, wk, bk = jax.random.split(key, 3)
        fan_in = sizes[i]
        bound = 1.0 / (fan_in ** 0.5)
        w = jax.random.uniform(wk, (sizes[i], sizes[i + 1]),
                               dtype=jnp.float32, minval=-bound, maxval=bound)
        b = jax.random.uniform(bk, (1, sizes[i + 1]),
                               dtype=jnp.float32, minval=-bound, maxval=bound)
        if i == 0:
            w = jnp.pad(w, ((0, IN_PAD - input_size), (0, 0)))
        if i == len(sizes) - 2:
            w = jnp.pad(w, ((0, 0), (0, OUT_PAD - num_classes)))
            b = jnp.pad(b, ((0, 0), (0, OUT_PAD - num_classes)))
        params += [w.astype(jnp.bfloat16), b]
    return params


def base_network_forward(x, params):
    """x: (B, C, H, W) or (B, input_size). Returns f32 logits (B, num_classes)."""
    b = x.shape[0]
    # Cast to bf16 BEFORE padding so the wrapper-side pad moves half the bytes;
    # allow_input_fusion below lets XLA fold reshape/cast/pad into the
    # pallas-call producer instead of materializing x in HBM twice.
    x2d = x.reshape(b, -1).astype(jnp.bfloat16)          # x.view(B, -1)

    # Balanced, 16-aligned batch tiles (bf16 min sublane tile is (16, 128)).
    b16 = _round_up(b, 16)
    n_tiles = _cdiv(b16, MAX_TILE_B)
    if b16 >= 32:
        n_tiles = max(n_tiles, 2)   # give v7x's 2nd TensorCore work; ~free on v5e/v6e
    tile_b = _round_up(_cdiv(b16, n_tiles), 16)
    b_pad = tile_b * n_tiles

    x_pad = jnp.pad(x2d, ((0, b_pad - b), (0, IN_PAD - x2d.shape[1])))

    grid = (n_tiles,)
    in_specs = [pl.BlockSpec((tile_b, IN_PAD), lambda i: (i, 0))]   # batch-tiled input
    for p in params:                                                # weights/biases resident
        in_specs.append(pl.BlockSpec(p.shape, lambda i: (0, 0)))
    out_spec = pl.BlockSpec((tile_b, OUT_PAD), lambda i: (i, 0))    # lane-dense output

    # Advisory cost estimate for XLA scheduling.
    sizes = [IN_PAD] + list(HIDDEN_SIZES) + [OUT_PAD]
    flops = sum(2 * b_pad * sizes[i] * sizes[i + 1] for i in range(len(sizes) - 1))
    bytes_accessed = (sum(int(p.size) * p.dtype.itemsize for p in params)
                      + int(x_pad.size) * 2 + b_pad * OUT_PAD * 2)

    out = pl.pallas_call(
        _mlp_kernel,
        out_shape=jax.ShapeDtypeStruct((b_pad, OUT_PAD), jnp.bfloat16),
        grid=grid,
        in_specs=in_specs,
        out_specs=out_spec,
        compiler_params=pltpu.CompilerParams(
            dimension_semantics=("parallel",),
            vmem_limit_bytes=32 << 20,                      # safe on v7x's 64 MiB VMEM
            allow_input_fusion=[True] + [False] * len(params)),
        cost_estimate=pl.CostEstimate(flops=flops, transcendentals=0,
                                      bytes_accessed=bytes_accessed),
    )(x_pad, *params)

    # TODO(synk): for repeated inference with static weights, hide the ~1.3 MB
    # bf16 weight fetch behind preceding JAX ops via a cross-call prefetch
    # (P10: memory_space=pl.ANY + manual make_async_copy into persistent VMEM),
    # or coalesce the 10 weight/bias DMAs into one packed blob; on v7x,
    # fp8 hidden-layer weights would halve the fetch again (needs accuracy
    # validation). Weight specs could also use pipeline_mode=pl.Buffered(1)
    # to drop the unused second buffer (grid-invariant index_map).
    return out[:b, :NUM_CLASSES].astype(jnp.float32)


def reference_forward(x, params):
    """Pure-JAX reference with identical dtypes/padding (bf16 matmuls, f32 acc,
    bf16 logit store)."""
    h = x.reshape(x.shape[0], -1).astype(jnp.bfloat16)
    h = jnp.pad(h, ((0, 0), (0, IN_PAD - h.shape[1])))
    n_layers = len(params) // 2
    for i in range(n_layers):
        acc = jnp.dot(h, params[2 * i],
                      preferred_element_type=jnp.float32) + params[2 * i + 1]
        if i < n_layers - 1:
            h = jnp.maximum(acc, 0.0).astype(jnp.bfloat16)
        else:
            h = acc.astype(jnp.bfloat16)
    return h[:, :NUM_CLASSES].astype(jnp.float32)


if __name__ == "__main__":
    key = jax.random.PRNGKey(0)
    pkey, xkey = jax.random.split(key)

    params = init_params(pkey)
    # MNIST-like NCHW input: (batch=8, channels=1, 28, 28) -> flattened to 784.
    x = jax.random.normal(xkey, (8, 1, 28, 28), dtype=jnp.float32)

    fwd = jax.jit(base_network_forward)
    out = jax.block_until_ready(fwd(x, params))

    ref = reference_forward(x, params)
    assert out.shape == (8, NUM_CLASSES), out.shape
    assert jnp.allclose(out, ref, atol=1e-2, rtol=1e-2), "mismatch vs reference"

    print("KERNEL_OK")
</pallas_src>

<mosaic_0001>
module attributes {stable_mosaic.version = 11 : i64} {
  func.func @_mlp_kernel(%arg0: i32, %arg1: memref<16x896xbf16, #tpu.memory_space<vmem>>, %arg2: memref<896x512xbf16, #tpu.memory_space<vmem>>, %arg3: memref<1x512xf32, #tpu.memory_space<vmem>>, %arg4: memref<512x256xbf16, #tpu.memory_space<vmem>>, %arg5: memref<1x256xf32, #tpu.memory_space<vmem>>, %arg6: memref<256x256xbf16, #tpu.memory_space<vmem>>, %arg7: memref<1x256xf32, #tpu.memory_space<vmem>>, %arg8: memref<256x128xbf16, #tpu.memory_space<vmem>>, %arg9: memref<1x128xf32, #tpu.memory_space<vmem>>, %arg10: memref<128x128xbf16, #tpu.memory_space<vmem>>, %arg11: memref<1x128xf32, #tpu.memory_space<vmem>>, %arg12: memref<16x128xbf16, #tpu.memory_space<vmem>>) attributes {dimension_semantics = [#tpu.dimension_semantics<parallel>], iteration_bounds = array<i64: 1>, scalar_prefetch = 0 : i64, scratch_operands = 0 : i64, tpu.core_type = #tpu.core_type<tc>, window_params = [{transform_indices = @transform_0, window_bounds = array<i64: 16, 896>}, {pipeline_mode = #tpu.pipeline_mode<synchronous>, transform_indices = @transform_1, window_bounds = array<i64: 896, 512>}, {pipeline_mode = #tpu.pipeline_mode<synchronous>, transform_indices = @transform_2, window_bounds = array<i64: 1, 512>}, {pipeline_mode = #tpu.pipeline_mode<synchronous>, transform_indices = @transform_3, window_bounds = array<i64: 512, 256>}, {pipeline_mode = #tpu.pipeline_mode<synchronous>, transform_indices = @transform_4, window_bounds = array<i64: 1, 256>}, {pipeline_mode = #tpu.pipeline_mode<synchronous>, transform_indices = @transform_5, window_bounds = array<i64: 256, 256>}, {pipeline_mode = #tpu.pipeline_mode<synchronous>, transform_indices = @transform_6, window_bounds = array<i64: 1, 256>}, {pipeline_mode = #tpu.pipeline_mode<synchronous>, transform_indices = @transform_7, window_bounds = array<i64: 256, 128>}, {pipeline_mode = #tpu.pipeline_mode<synchronous>, transform_indices = @transform_8, window_bounds = array<i64: 1, 128>}, {pipeline_mode = #tpu.pipeline_mode<synchronous>, transform_indices = @transform_9, window_bounds = array<i64: 128, 128>}, {pipeline_mode = #tpu.pipeline_mode<synchronous>, transform_indices = @transform_10, window_bounds = array<i64: 1, 128>}, {transform_indices = @transform_11, window_bounds = array<i64: 16, 128>}]} {
    %c0 = arith.constant 0 : index
    %c0_0 = arith.constant 0 : index
    %0 = vector.load %arg1[%c0, %c0_0] : memref<16x896xbf16, #tpu.memory_space<vmem>>, vector<16x896xbf16>
    %c0_1 = arith.constant 0 : index
    %c0_2 = arith.constant 0 : index
    %1 = vector.load %arg2[%c0_1, %c0_2] : memref<896x512xbf16, #tpu.memory_space<vmem>>, vector<896x512xbf16>
    %c0_3 = arith.constant 0 : index
    %c0_4 = arith.constant 0 : index
    %2 = vector.load %arg3[%c0_3, %c0_4] : memref<1x512xf32, #tpu.memory_space<vmem>>, vector<1x512xf32>
    %cst = arith.constant dense<0.000000e+00> : vector<16x512xf32>
    %3 = tpu.matmul %0, %1, %cst {dimension_numbers = #tpu.dot_dimension_numbers<[1], [0], [0], [1], [0, 0, 1, 1], [], []>} : vector<16x896xbf16>, vector<896x512xbf16>, vector<16x512xf32> -> vector<16x512xf32>
    %4 = vector.broadcast %2 : vector<1x512xf32> to vector<16x512xf32>
    %5 = arith.addf %3, %4 : vector<16x512xf32>
    %cst_5 = arith.constant 0.000000e+00 : f32
    %6 = vector.broadcast %cst_5 : f32 to vector<16x512xf32>
    %7 = arith.maximumf %5, %6 : vector<16x512xf32>
    %8 = arith.truncf %7 : vector<16x512xf32> to vector<16x512xbf16>
    %c0_6 = arith.constant 0 : index
    %c0_7 = arith.constant 0 : index
    %9 = vector.load %arg4[%c0_6, %c0_7] : memref<512x256xbf16, #tpu.memory_space<vmem>>, vector<512x256xbf16>
    %c0_8 = arith.constant 0 : index
    %c0_9 = arith.constant 0 : index
    %10 = vector.load %arg5[%c0_8, %c0_9] : memref<1x256xf32, #tpu.memory_space<vmem>>, vector<1x256xf32>
    %cst_10 = arith.constant dense<0.000000e+00> : vector<16x256xf32>
    %11 = tpu.matmul %8, %9, %cst_10 {dimension_numbers = #tpu.dot_dimension_numbers<[1], [0], [0], [1], [0, 0, 1, 1], [], []>} : vector<16x512xbf16>, vector<512x256xbf16>, vector<16x256xf32> -> vector<16x256xf32>
    %12 = vector.broadcast %10 : vector<1x256xf32> to vector<16x256xf32>
    %13 = arith.addf %11, %12 : vector<16x256xf32>
    %cst_11 = arith.constant 0.000000e+00 : f32
    %14 = vector.broadcast %cst_11 : f32 to vector<16x256xf32>
    %15 = arith.maximumf %13, %14 : vector<16x256xf32>
    %16 = arith.truncf %15 : vector<16x256xf32> to vector<16x256xbf16>
    %c0_12 = arith.constant 0 : index
    %c0_13 = arith.constant 0 : index
    %17 = vector.load %arg6[%c0_12, %c0_13] : memref<256x256xbf16, #tpu.memory_space<vmem>>, vector<256x256xbf16>
    %c0_14 = arith.constant 0 : index
    %c0_15 = arith.constant 0 : index
    %18 = vector.load %arg7[%c0_14, %c0_15] : memref<1x256xf32, #tpu.memory_space<vmem>>, vector<1x256xf32>
    %cst_16 = arith.constant dense<0.000000e+00> : vector<16x256xf32>
    %19 = tpu.matmul %16, %17, %cst_16 {dimension_numbers = #tpu.dot_dimension_numbers<[1], [0], [0], [1], [0, 0, 1, 1], [], []>} : vector<16x256xbf16>, vector<256x256xbf16>, vector<16x256xf32> -> vector<16x256xf32>
    %20 = vector.broadcast %18 : vector<1x256xf32> to vector<16x256xf32>
    %21 = arith.addf %19, %20 : vector<16x256xf32>
    %cst_17 = arith.constant 0.000000e+00 : f32
    %22 = vector.broadcast %cst_17 : f32 to vector<16x256xf32>
    %23 = arith.maximumf %21, %22 : vector<16x256xf32>
    %24 = arith.truncf %23 : vector<16x256xf32> to vector<16x256xbf16>
    %c0_18 = arith.constant 0 : index
    %c0_19 = arith.constant 0 : index
    %25 = vector.load %arg8[%c0_18, %c0_19] : memref<256x128xbf16, #tpu.memory_space<vmem>>, vector<256x128xbf16>
    %c0_20 = arith.constant 0 : index
    %c0_21 = arith.constant 0 : index
    %26 = vector.load %arg9[%c0_20, %c0_21] : memref<1x128xf32, #tpu.memory_space<vmem>>, vector<1x128xf32>
    %cst_22 = arith.constant dense<0.000000e+00> : vector<16x128xf32>
    %27 = tpu.matmul %24, %25, %cst_22 {dimension_numbers = #tpu.dot_dimension_numbers<[1], [0], [0], [1], [0, 0, 1, 1], [], []>} : vector<16x256xbf16>, vector<256x128xbf16>, vector<16x128xf32> -> vector<16x128xf32>
    %28 = vector.broadcast %26 : vector<1x128xf32> to vector<16x128xf32>
    %29 = arith.addf %27, %28 : vector<16x128xf32>
    %cst_23 = arith.constant 0.000000e+00 : f32
    %30 = vector.broadcast %cst_23 : f32 to vector<16x128xf32>
    %31 = arith.maximumf %29, %30 : vector<16x128xf32>
    %32 = arith.truncf %31 : vector<16x128xf32> to vector<16x128xbf16>
    %c0_24 = arith.constant 0 : index
    %c0_25 = arith.constant 0 : index
    %33 = vector.load %arg10[%c0_24, %c0_25] : memref<128x128xbf16, #tpu.memory_space<vmem>>, vector<128x128xbf16>
    %c0_26 = arith.constant 0 : index
    %c0_27 = arith.constant 0 : index
    %34 = vector.load %arg11[%c0_26, %c0_27] : memref<1x128xf32, #tpu.memory_space<vmem>>, vector<1x128xf32>
    %cst_28 = arith.constant dense<0.000000e+00> : vector<16x128xf32>
    %35 = tpu.matmul %32, %33, %cst_28 {dimension_numbers = #tpu.dot_dimension_numbers<[1], [0], [0], [1], [0, 0, 1, 1], [], []>} : vector<16x128xbf16>, vector<128x128xbf16>, vector<16x128xf32> -> vector<16x128xf32>
    %36 = vector.broadcast %34 : vector<1x128xf32> to vector<16x128xf32>
    %37 = arith.addf %35, %36 : vector<16x128xf32>
    %38 = arith.truncf %37 : vector<16x128xf32> to vector<16x128xbf16>
    %c0_29 = arith.constant 0 : index
    %c0_30 = arith.constant 0 : index
    %39 = vector.load %arg12[%c0_29, %c0_30] : memref<16x128xbf16, #tpu.memory_space<vmem>>, vector<16x128xbf16>
    tpu.vector_store %arg12[%c0_29, %c0_30], %38 {strides = array<i32>} : memref<16x128xbf16, #tpu.memory_space<vmem>>, vector<16x128xbf16>,
    return
  }
  func.func @transform_0(%arg0: i32) -> (i32, i32) {
    %c0_i32 = arith.constant 0 : i32
    %c0_i32_0 = arith.constant 0 : i32
    return %arg0, %c0_i32 : i32, i32
  }
  func.func @transform_1(%arg0: i32) -> (i32, i32) {
    %c0_i32 = arith.constant 0 : i32
    %c0_i32_0 = arith.constant 0 : i32
    %c0_i32_1 = arith.constant 0 : i32
    return %c0_i32, %c0_i32_0 : i32, i32
  }
  func.func @transform_2(%arg0: i32) -> (i32, i32) {
    %c0_i32 = arith.constant 0 : i32
    %c0_i32_0 = arith.constant 0 : i32
    %c0_i32_1 = arith.constant 0 : i32
    return %c0_i32, %c0_i32_0 : i32, i32
  }
  func.func @transform_3(%arg0: i32) -> (i32, i32) {
    %c0_i32 = arith.constant 0 : i32
    %c0_i32_0 = arith.constant 0 : i32
    %c0_i32_1 = arith.constant 0 : i32
    return %c0_i32, %c0_i32_0 : i32, i32
  }
  func.func @transform_4(%arg0: i32) -> (i32, i32) {
    %c0_i32 = arith.constant 0 : i32
    %c0_i32_0 = arith.constant 0 : i32
    %c0_i32_1 = arith.constant 0 : i32
    return %c0_i32, %c0_i32_0 : i32, i32
  }
  func.func @transform_5(%arg0: i32) -> (i32, i32) {
    %c0_i32 = arith.constant 0 : i32
    %c0_i32_0 = arith.constant 0 : i32
    %c0_i32_1 = arith.constant 0 : i32
    return %c0_i32, %c0_i32_0 : i32, i32
  }
  func.func @transform_6(%arg0: i32) -> (i32, i32) {
    %c0_i32 = arith.constant 0 : i32
    %c0_i32_0 = arith.constant 0 : i32
    %c0_i32_1 = arith.constant 0 : i32
    return %c0_i32, %c0_i32_0 : i32, i32
  }
  func.func @transform_7(%arg0: i32) -> (i32, i32) {
    %c0_i32 = arith.constant 0 : i32
    %c0_i32_0 = arith.constant 0 : i32
    %c0_i32_1 = arith.constant 0 : i32
    return %c0_i32, %c0_i32_0 : i32, i32
  }
  func.func @transform_8(%arg0: i32) -> (i32, i32) {
    %c0_i32 = arith.constant 0 : i32
    %c0_i32_0 = arith.constant 0 : i32
    %c0_i32_1 = arith.constant 0 : i32
    return %c0_i32, %c0_i32_0 : i32, i32
  }
  func.func @transform_9(%arg0: i32) -> (i32, i32) {
    %c0_i32 = arith.constant 0 : i32
    %c0_i32_0 = arith.constant 0 : i32
    %c0_i32_1 = arith.constant 0 : i32
    return %c0_i32, %c0_i32_0 : i32, i32
  }
  func.func @transform_10(%arg0: i32) -> (i32, i32) {
    %c0_i32 = arith.constant 0 : i32
    %c0_i32_0 = arith.constant 0 : i32
    %c0_i32_1 = arith.constant 0 : i32
    return %c0_i32, %c0_i32_0 : i32, i32
  }
  func.func @transform_11(%arg0: i32) -> (i32, i32) {
    %c0_i32 = arith.constant 0 : i32
    %c0_i32_0 = arith.constant 0 : i32
    return %arg0, %c0_i32 : i32, i32
  }
}

</mosaic_0001>

<bundles_post_ra>
// kernel: base_network_forward.2
= control target key start
LH: loop header
LB: loop body
LE: loop exit
PB: predicated region body
PF: predicated region fallthrough
CT: control target
= control target key end

     0   :  { %s4591_s0 = inlined_call_operand.hbm [shape: bf16[896,512], index: 0, kind: input, shape index: {}]   ;;  %s4592_s1 = inlined_call_operand.vmem [shape: f32[1,512], index: 1, kind: input, shape index: {}]   ;;  %s4593_s2 = inlined_call_operand.vmem [shape: bf16[512,256], index: 2, kind: input, shape index: {}]   ;;  %s4594_s3 = inlined_call_operand.vmem [shape: f32[1,256], index: 3, kind: input, shape index: {}]   ;;  %s4595_s4 = inlined_call_operand.hbm [shape: bf16[256,256], index: 4, kind: input, shape index: {}]   ;;  %s4596_s5 = inlined_call_operand.vmem [shape: f32[1,256], index: 5, kind: input, shape index: {}]   ;;  %s4597_s6 = inlined_call_operand.hbm [shape: bf16[256,128], index: 6, kind: input, shape index: {}]   ;;  %s4598_s7 = inlined_call_operand.vmem [shape: f32[1,128], index: 7, kind: input, shape index: {}]   ;;  %s4599_s8 = inlined_call_operand.hbm [shape: bf16[128,128], index: 8, kind: input, shape index: {}]   ;;  %s4600_s9 = inlined_call_operand.vmem [shape: f32[1,128], index: 9, kind: input, shape index: {}]   ;;  %s4601_s10 = inlined_call_operand.vmem [shape: bf16[8,784], index: 10, kind: input, shape index: {}]   ;;  %s4602_s11 = inlined_call_operand.<no memory space> [shape: bf16[], index: 11, kind: input, shape index: {}]   ;;  %s4603_s12 = inlined_call_operand.vmem [shape: bf16[16,128], index: 12, kind: output, shape index: {}]  }
   0x1   :  { %v17_v0 = vstv %s4602_s11 }
   0x2   :  { %v4284_v1 = vunpack.i.l.bf16 %v17_v0 }
   0x3   :  { %22 = vsyncpa [#allocation8], 0 }
   0x4   :  { %23 = vsyncpa [#allocation10], 0 }
   0x5   :  { %24 = vsyncpa [#allocation13], 0  ;;  %s4203_s23 = smov [#allocation9]   ;;  %s4109_s27 = scalar_lea.hbm %s4595_s4, 4096 }
   0x6   :  { %s50_s24 = sshll.u32 %s4203_s23, 4  ;;  %p4110_p0 = scmp.ne.s32.totalorder %s4595_s4, %s4109_s27  ;;  %s51_s24 = int_to_ptr.vmem [resolvable:$true] %s50_s24 }
   0x7   :  { %p4113_p1 = scmp.lt.u32.totalorder %s4109_s27, %s4595_s4 }
   0x9   :  { %p4115_p2 = pnand %p4113_p1, %p4110_p0 }
   0xb   :  { %4118 = shalt.err (!%p4115_p2)
}
   0xc   :  { %s4119_s11 = scalar_lea.vmem %s51_s24, 4096  ;;  %p4124_p4 = scmp.lt.s32.totalorder %s51_s24, %s51_s24 }
   0xd   :  { %p4120_p3 = scmp.ne.s32.totalorder %s51_s24, %s4119_s11  ;;  %p4125_p5 = scmp.lt.s32.totalorder %s4119_s11, %s4119_s11 }
   0xf   :  { %p4126_p6 = por %p4125_p5, %p4124_p4 }
  0x11   :  { %p4127_p7 = pnand %p4126_p6, %p4120_p3 }
  0x13   :  { %4130 = shalt.err (!%p4127_p7)
}
  0x14   :  { %s4204_s14 = smov 128   ;;  %s4205_s15 = smov 8  }
  0x15   :  { %56 = dma.hbm_to_vmem [thread:$0]  %s4595_s4, 4096, %s51_s24, [#allocation10], %s4204_s14, %s4204_s14, %s4205_s15  }
  0x16   :  { %s4206_s18 = smov [#allocation7]   ;;  %s4131_s22 = scalar_lea.hbm %s4591_s0, 28672 }
  0x17   :  { %s32_s19 = sshll.u32 %s4206_s18, 4  ;;  %p4132_p8 = scmp.ne.s32.totalorder %s4591_s0, %s4131_s22  ;;  %s33_s19 = int_to_ptr.vmem [resolvable:$true] %s32_s19 }
  0x18   :  { %p4135_p9 = scmp.lt.u32.totalorder %s4131_s22, %s4591_s0 }
  0x1a   :  { %p4137_p10 = pnand %p4135_p9, %p4132_p8 }
  0x1c   :  { %4140 = shalt.err (!%p4137_p10)
}
  0x1d   :  { %s4141_s28 = scalar_lea.vmem %s33_s19, 28672  ;;  %p4146_p12 = scmp.lt.s32.totalorder %s33_s19, %s33_s19 }
  0x1e   :  { %p4142_p11 = scmp.ne.s32.totalorder %s33_s19, %s4141_s28  ;;  %p4147_p13 = scmp.lt.s32.totalorder %s4141_s28, %s4141_s28 }
  0x20   :  { %p4148_p0 = por %p4147_p13, %p4146_p12 }
  0x22   :  { %p4149_p1 = pnand %p4148_p0, %p4142_p11 }
  0x24   :  { %4152 = shalt.err (!%p4149_p1)
}
  0x25   :  { %s4207_s4 = smov 256   ;;  %s4208_s24 = smov 16  }
  0x26   :  { %38 = dma.hbm_to_vmem [thread:$0]  %s4591_s0, 28672, %s33_s19, [#allocation8], %s4207_s4, %s4207_s4, %s4208_s24  }
  0x27   :  { %s4209_s13 = smov [#allocation11]   ;;  %s4153_s16 = scalar_lea.hbm %s4597_s6, 2048 }
  0x28   :  { %s64_s11 = sshll.u32 %s4209_s13, 4  ;;  %p4154_p2 = scmp.ne.s32.totalorder %s4597_s6, %s4153_s16  ;;  %s65_s11 = int_to_ptr.vmem [resolvable:$true] %s64_s11 }
  0x29   :  { %p4157_p3 = scmp.lt.u32.totalorder %s4153_s16, %s4597_s6 }
  0x2b   :  { %p4159_p4 = pnand %p4157_p3, %p4154_p2 }
  0x2d   :  { %4162 = shalt.err (!%p4159_p4)
}
  0x2e   :  { %s4163_s22 = scalar_lea.vmem %s65_s11, 2048  ;;  %p4168_p6 = scmp.lt.s32.totalorder %s65_s11, %s65_s11 }
  0x2f   :  { %p4164_p5 = scmp.ne.s32.totalorder %s65_s11, %s4163_s22  ;;  %p4169_p7 = scmp.lt.s32.totalorder %s4163_s22, %s4163_s22 }
  0x31   :  { %p4170_p8 = por %p4169_p7, %p4168_p6 }
  0x33   :  { %p4171_p9 = pnand %p4170_p8, %p4164_p5 }
  0x35   :  { %4174 = shalt.err (!%p4171_p9)
}
  0x36   :  { %s4210_s0 = smov 64   ;;  %s4211_s19 = smov 4  }
  0x37   :  { %70 = dma.hbm_to_vmem [thread:$0]  %s4597_s6, 2048, %s65_s11, [#allocation10], %s4210_s0, %s4210_s0, %s4211_s19  }
  0x38   :  { %s4212_s26 = smov [#allocation12]   ;;  %s4175_s24 = scalar_lea.hbm %s4599_s8, 1024 }
  0x39   :  { %s78_s27 = sshll.u32 %s4212_s26, 4  ;;  %p4176_p10 = scmp.ne.s32.totalorder %s4599_s8, %s4175_s24  ;;  %s79_s27 = int_to_ptr.vmem [resolvable:$true] %s78_s27 }
  0x3a   :  { %p4179_p11 = scmp.lt.u32.totalorder %s4175_s24, %s4599_s8 }
  0x3c   :  { %p4181_p12 = pnand %p4179_p11, %p4176_p10 }
  0x3e   :  { %4184 = shalt.err (!%p4181_p12)
}
  0x3f   :  { %s4185_s15 = scalar_lea.vmem %s79_s27, 1024  ;;  %p4190_p0 = scmp.lt.s32.totalorder %s79_s27, %s79_s27 }
  0x40   :  { %p4186_p13 = scmp.ne.s32.totalorder %s79_s27, %s4185_s15  ;;  %p4191_p1 = scmp.lt.s32.totalorder %s4185_s15, %s4185_s15 }
  0x42   :  { %p4192_p2 = por %p4191_p1, %p4190_p0 }
  0x44   :  { %p4193_p3 = pnand %p4192_p2, %p4186_p13 }
  0x46   :  { %4196 = shalt.err (!%p4193_p3)
}
  0x47   :  { %84 = dma.hbm_to_vmem [thread:$0]  %s4599_s8, 1024, %s79_s27, [#allocation13], %s4210_s0, %s4210_s0, %s4211_s19  }
  0x48   :  { %4197 = dma.done.wait [#allocation8], 28672  }
  0x49   :  { %4198 = vsyncadd [#allocation8], 4294938624 }
  0x4a   :  { %4199 = dma.done.wait [#allocation10], 6144  }
  0x4b   :  { %4200 = vsyncadd [#allocation10], 4294961152 }
  0x4c   :  { %4201 = dma.done.wait [#allocation13], 1024  }
  0x4d   :  { %4202 = vsyncadd [#allocation13], 4294966272  ;;  %v3476_v2 = vpack.c.bf16 %v4284_v1, %v4284_v1  ;;  %v3599_v3 = vld [vmem:[#allocation7 + $0x4] ss:$16 sps:$4 sm:$0xff]   ;;  %v3601_v4 = vld [vmem:[#allocation7 + $0xc] ss:$16 sps:$4 sm:$0xff]   ;;  %v242_v39 = vlaneseq }
  0x4e   :  { %1690 = vmatprep.subr.bf16.mxu0 %v3599_v3  ;;  %v3603_v5 = vld [vmem:[#allocation7] ss:$16 sps:$4 sm:$0xff]   ;;  %v3604_v6 = vld [vmem:[#allocation7 + $0x8] ss:$16 sps:$4 sm:$0xff]   ;;  %1862 = vmatprep.subr.bf16.mxu1 %v3601_v4  ;;  %v3605_v7 = vld [vmem:[#allocation7 + $0x24] ss:$16 sps:$4 sm:$0xff]  }
  0x4f   :  { %3477 = vst [vmem:[#allocation14 + $0x20] sm:$0xff] %v3476_v2   ;;  %3482 = vst [vmem:[#allocation14 + $0x28] sm:$0xff] %v3476_v2   ;;  %1691 = vmatpush1.bf16.msra.mxu0 %v3603_v5  ;;  %1863 = vmatpush1.bf16.msra.mxu1 %v3604_v6  ;;  %v3607_v8 = vld [vmem:[#allocation7 + $0x2c] ss:$16 sps:$4 sm:$0xff]   ;;  %v3609_v9 = vld [vmem:[#allocation7 + $0x20] ss:$16 sps:$4 sm:$0xff]  }
  0x50   :  { %3487 = vst [vmem:[#allocation14 + $0x30] sm:$0xff] %v3476_v2   ;;  %1692 = vmatprep.subr.bf16.mxu0 %v3605_v7  ;;  %v3610_v10 = vld [vmem:[#allocation7 + $0x28] ss:$16 sps:$4 sm:$0xff]   ;;  %1864 = vmatprep.subr.bf16.mxu1 %v3607_v8  ;;  %v3611_v11 = vld [vmem:[#allocation7 + $0x44] ss:$16 sps:$4 sm:$0xff]   ;;  %v243_v43 = vand.u32 127, %v242_v39 }
  0x51   :  { %v3613_v12 = vld [vmem:[#allocation7 + $0x4c] ss:$16 sps:$4 sm:$0xff]   ;;  %v3615_v13 = vld [vmem:[#allocation7 + $0x40] ss:$16 sps:$4 sm:$0xff]   ;;  %v3616_v14 = vld [vmem:[#allocation7 + $0x48] ss:$16 sps:$4 sm:$0xff]  }
  0x52   :  { %v3617_v15 = vld [vmem:[#allocation7 + $0x64] ss:$16 sps:$4 sm:$0xff]   ;;  %v3619_v16 = vld [vmem:[#allocation7 + $0x6c] ss:$16 sps:$4 sm:$0xff]   ;;  %v3621_v17 = vld [vmem:[#allocation7 + $0x60] ss:$16 sps:$4 sm:$0xff]  }
  0x53   :  { %1693 = vmatpush1.bf16.msra.mxu0 %v3609_v9  ;;  %1865 = vmatpush1.bf16.msra.mxu1 %v3610_v10  ;;  %v3622_v18 = vld [vmem:[#allocation7 + $0x68] ss:$16 sps:$4 sm:$0xff]   ;;  %v3623_v19 = vld [vmem:[#allocation7 + $0x84] ss:$16 sps:$4 sm:$0xff]   ;;  %v3625_v20 = vld [vmem:[#allocation7 + $0x8c] ss:$16 sps:$4 sm:$0xff]  }
  0x54   :  { %1694 = vmatprep.subr.bf16.mxu0 %v3611_v11  ;;  %1866 = vmatprep.subr.bf16.mxu1 %v3613_v12  ;;  %v3627_v21 = vld [vmem:[#allocation7 + $0x80] ss:$16 sps:$4 sm:$0xff]   ;;  %v3628_v22 = vld [vmem:[#allocation7 + $0x88] ss:$16 sps:$4 sm:$0xff]   ;;  %v3629_v23 = vld [vmem:[#allocation7 + $0xa4] ss:$16 sps:$4 sm:$0xff]  }
  0x55   :  { %v3631_v24 = vld [vmem:[#allocation7 + $0xac] ss:$16 sps:$4 sm:$0xff]   ;;  %v3633_v25 = vld [vmem:[#allocation7 + $0xa0] ss:$16 sps:$4 sm:$0xff]   ;;  %v3634_v26 = vld [vmem:[#allocation7 + $0xa8] ss:$16 sps:$4 sm:$0xff]  }
  0x56   :  { %v3635_v27 = vld [vmem:[#allocation7 + $0xc4] ss:$16 sps:$4 sm:$0xff]   ;;  %v3637_v28 = vld [vmem:[#allocation7 + $0xcc] ss:$16 sps:$4 sm:$0xff]   ;;  %v3639_v29 = vld [vmem:[#allocation7 + $0xc0] ss:$16 sps:$4 sm:$0xff]  }
  0x57   :  { %1695 = vmatpush1.bf16.msra.mxu0 %v3615_v13  ;;  %1867 = vmatpush1.bf16.msra.mxu1 %v3616_v14  ;;  %v3640_v30 = vld [vmem:[#allocation7 + $0xc8] ss:$16 sps:$4 sm:$0xff]   ;;  %v3641_v31 = vld [vmem:[#allocation7 + $0xe4] ss:$16 sps:$4 sm:$0xff]   ;;  %v3643_v32 = vld [vmem:[#allocation7 + $0xec] ss:$16 sps:$4 sm:$0xff]  }
  0x58   :  { %1696 = vmatprep.subr.bf16.mxu0 %v3617_v15  ;;  %1868 = vmatprep.subr.bf16.mxu1 %v3619_v16  ;;  %v3645_v33 = vld [vmem:[#allocation7 + $0xe0] ss:$16 sps:$4 sm:$0xff]   ;;  %v3646_v34 = vld [vmem:[#allocation7 + $0xe8] ss:$16 sps:$4 sm:$0xff]   ;;  %v3647_v35 = vld [vmem:[#allocation7 + $0x104] ss:$16 sps:$4 sm:$0xff]  }
  0x59   :  { %v3649_v36 = vld [vmem:[#allocation7 + $0x10c] ss:$16 sps:$4 sm:$0xff]   ;;  %v3651_v37 = vld [vmem:[#allocation7 + $0x100] ss:$16 sps:$4 sm:$0xff]   ;;  %v3652_v38 = vld [vmem:[#allocation7 + $0x108] ss:$16 sps:$4 sm:$0xff]  }
  0x5a   :  { %v3653_v40 = vld [vmem:[#allocation7 + $0x124] ss:$16 sps:$4 sm:$0xff]   ;;  %v3655_v41 = vld [vmem:[#allocation7 + $0x12c] ss:$16 sps:$4 sm:$0xff]   ;;  %v3657_v42 = vld [vmem:[#allocation7 + $0x120] ss:$16 sps:$4 sm:$0xff]  }
  0x5b   :  { %1697 = vmatpush1.bf16.msra.mxu0 %v3621_v17  ;;  %1869 = vmatpush1.bf16.msra.mxu1 %v3622_v18  ;;  %v3658_v44 = vld [vmem:[#allocation7 + $0x128] ss:$16 sps:$4 sm:$0xff]   ;;  %v3659_v45 = vld [vmem:[#allocation7 + $0x144] ss:$16 sps:$4 sm:$0xff]   ;;  %v3661_v46 = vld [vmem:[#allocation7 + $0x14c] ss:$16 sps:$4 sm:$0xff]  }
  0x5c   :  { %1698 = vmatprep.subr.bf16.mxu0 %v3623_v19  ;;  %1870 = vmatprep.subr.bf16.mxu1 %v3625_v20  ;;  %v3663_v47 = vld [vmem:[#allocation7 + $0x140] ss:$16 sps:$4 sm:$0xff]   ;;  %v3664_v48 = vld [vmem:[#allocation7 + $0x148] ss:$16 sps:$4 sm:$0xff]   ;;  %v244_v49 = vadd.s32 768, %v243_v43  ;;  %vm4215_vm1 = vmmov 0  }
  0x5d   :  { %v3665_v50 = vld [vmem:[#allocation7 + $0x164] ss:$16 sps:$4 sm:$0xff]   ;;  %v3667_v51 = vld [vmem:[#allocation7 + $0x16c] ss:$16 sps:$4 sm:$0xff]   ;;  %v3100_v53 = vld [vmem:[%s4601_s10 + $0x18] sm:$0xf] }
  0x5e   :  { %v108_v52 = vld [vmem:[%s4601_s10] sm:$0xff]   ;;  %vm245_vm0 = vcmp.lt.s32.totalorder %v244_v49, 784  ;;  %v3670_v55 = vld [vmem:[#allocation7 + $0x168] ss:$16 sps:$4 sm:$0xff]   ;;  %v240_v56 = vunpack.c.l.bf16 %v3100_v53  ;;  %v3673_v58 = vld [vmem:[#allocation7 + $0x18c] ss:$16 sps:$4 sm:$0xff]  }
  0x5f   :  { %1699 = vmatpush1.bf16.msra.mxu0 %v3627_v21  ;;  %1871 = vmatpush1.bf16.msra.mxu1 %v3628_v22  ;;  %118 = vst [vmem:[#allocation14] sm:$0xff] %v108_v52   ;;  %v3669_v54 = vld [vmem:[#allocation7 + $0x160] ss:$16 sps:$4 sm:$0xff]   ;;  %v3671_v57 = vld [vmem:[#allocation7 + $0x184] ss:$16 sps:$4 sm:$0xff]  }
  0x60   :  { %1700 = vmatprep.subr.bf16.mxu0 %v3629_v23  ;;  %1872 = vmatprep.subr.bf16.mxu1 %v3631_v24  ;;  %v246_v59 = vsel %vm245_vm0, %v240_v56, %v4284_v1  ;;  %v3675_v61 = vld [vmem:[#allocation7 + $0x180] ss:$16 sps:$4 sm:$0xff]   ;;  %v3676_v62 = vld [vmem:[#allocation7 + $0x188] ss:$16 sps:$4 sm:$0xff]   ;;  %v3677_v63 = vld [vmem:[#allocation7 + $0x1a4] ss:$16 sps:$4 sm:$0xff]  }
  0x61   :  { %v3471_v60 = vpack.c.bf16 %v4284_v1, %v246_v59  ;;  %v3679_v0 = vld [vmem:[#allocation7 + $0x1ac] ss:$16 sps:$4 sm:$0xff]   ;;  %v3681_v2 = vld [vmem:[#allocation7 + $0x1a0] ss:$16 sps:$4 sm:$0xff]   ;;  %v3682_v3 = vld [vmem:[#allocation7 + $0x1a8] ss:$16 sps:$4 sm:$0xff]  }
  0x62   :  { %v3683_v4 = vld [vmem:[#allocation7 + $0x1c4] ss:$16 sps:$4 sm:$0xff]   ;;  %v3685_v5 = vld [vmem:[#allocation7 + $0x1cc] ss:$16 sps:$4 sm:$0xff]   ;;  %v3687_v6 = vld [vmem:[#allocation7 + $0x1c0] ss:$16 sps:$4 sm:$0xff]  }
  0x63   :  { %1701 = vmatpush1.bf16.msra.mxu0 %v3633_v25  ;;  %1873 = vmatpush1.bf16.msra.mxu1 %v3634_v26  ;;  %3472 = vst [vmem:[#allocation14 + $0x18] sm:$0xff] %v3471_v60   ;;  %v3688_v1 = vld [vmem:[#allocation7 + $0x1c8] ss:$16 sps:$4 sm:$0xff]   ;;  %v3689_v8 = vld [vmem:[#allocation7 + $0x1e4] ss:$16 sps:$4 sm:$0xff]  }
  0x64   :  { %1702 = vmatprep.subr.bf16.mxu0 %v3635_v27  ;;  %1874 = vmatprep.subr.bf16.mxu1 %v3637_v28  ;;  %v3691_v9 = vld [vmem:[#allocation7 + $0x1ec] ss:$16 sps:$4 sm:$0xff]   ;;  %v3693_v10 = vld [vmem:[#allocation7 + $0x1e0] ss:$16 sps:$4 sm:$0xff]   ;;  %v3694_v11 = vld [vmem:[#allocation7 + $0x1e8] ss:$16 sps:$4 sm:$0xff]  }
  0x65   :  { %v3700_v12 = vld [vmem:[#allocation7 + $0x204] ss:$16 sps:$4 sm:$0xff]   ;;  %v3703_v13 = vld [vmem:[#allocation7 + $0x20c] ss:$16 sps:$4 sm:$0xff]   ;;  %v3698_v15 = vld [vmem:[#allocation7 + $0x200] ss:$16 sps:$4 sm:$0xff]  }
  0x66   :  { %v3697_v7 = vld [vmem:[#allocation14 + $0x4] ss:$28 sps:$4 sm:$0xff]   ;;  %v3701_v16 = vld [vmem:[#allocation7 + $0x208] ss:$16 sps:$4 sm:$0xff]   ;;  %v3709_v18 = vld [vmem:[#allocation7 + $0x22c] ss:$16 sps:$4 sm:$0xff]  }
  0x67   :  { %1703 = vmatpush1.bf16.msra.mxu0 %v3639_v29  ;;  %1875 = vmatpush1.bf16.msra.mxu1 %v3640_v30  ;;  %v3706_v17 = vld [vmem:[#allocation7 + $0x224] ss:$16 sps:$4 sm:$0xff]   ;;  %v3704_v19 = vld [vmem:[#allocation7 + $0x220] ss:$16 sps:$4 sm:$0xff]   ;;  %v3707_v20 = vld [vmem:[#allocation7 + $0x228] ss:$16 sps:$4 sm:$0xff]  }
  0x68   :  { %1704 = vmatprep.subr.bf16.mxu0 %v3641_v31  ;;  %1876 = vmatprep.subr.bf16.mxu1 %v3643_v32  ;;  %v3712_v21 = vld [vmem:[#allocation7 + $0x244] ss:$16 sps:$4 sm:$0xff]   ;;  %v3715_v22 = vld [vmem:[#allocation7 + $0x24c] ss:$16 sps:$4 sm:$0xff]   ;;  %v3710_v23 = vld [vmem:[#allocation7 + $0x240] ss:$16 sps:$4 sm:$0xff]  }
  0x69   :  { %1722 = vmatprep.mubr.bf16.mxu0 %v3697_v7  ;;  %1894 = vmatprep.mubr.bf16.mxu1 %v3697_v7  ;;  %v3713_v24 = vld [vmem:[#allocation7 + $0x248] ss:$16 sps:$4 sm:$0xff]   ;;  %v3718_v25 = vld [vmem:[#allocation7 + $0x264] ss:$16 sps:$4 sm:$0xff]   ;;  %v3721_v26 = vld [vmem:[#allocation7 + $0x26c] ss:$16 sps:$4 sm:$0xff]  }
  0x6a   :  { %v3695_v14 = vld [vmem:[#allocation14] ss:$28 sps:$4 sm:$0xff]   ;;  %v3719_v28 = vld [vmem:[#allocation7 + $0x268] ss:$16 sps:$4 sm:$0xff]   ;;  %v3724_v29 = vld [vmem:[#allocation7 + $0x284] ss:$16 sps:$4 sm:$0xff]  }
  0x6b   :  { %1705 = vmatpush1.bf16.msra.mxu0 %v3645_v33  ;;  %1877 = vmatpush1.bf16.msra.mxu1 %v3646_v34  ;;  %v3716_v27 = vld [vmem:[#allocation7 + $0x260] ss:$16 sps:$4 sm:$0xff]   ;;  %v3727_v30 = vld [vmem:[#allocation7 + $0x28c] ss:$16 sps:$4 sm:$0xff]   ;;  %v3725_v32 = vld [vmem:[#allocation7 + $0x288] ss:$16 sps:$4 sm:$0xff]  }
  0x6c   :  { %1706 = vmatprep.subr.bf16.mxu0 %v3647_v35  ;;  %1878 = vmatprep.subr.bf16.mxu1 %v3649_v36  ;;  %v3722_v31 = vld [vmem:[#allocation7 + $0x280] ss:$16 sps:$4 sm:$0xff]   ;;  %v3730_v33 = vld [vmem:[#allocation7 + $0x2a4] ss:$16 sps:$4 sm:$0xff]   ;;  %v3733_v34 = vld [vmem:[#allocation7 + $0x2ac] ss:$16 sps:$4 sm:$0xff]  }
  0x6d   :  { %v3728_v35 = vld [vmem:[#allocation7 + $0x2a0] ss:$16 sps:$4 sm:$0xff]   ;;  %v3731_v36 = vld [vmem:[#allocation7 + $0x2a8] ss:$16 sps:$4 sm:$0xff]   ;;  %v3748_v49 = vld [vmem:[#allocation7 + $0x304] ss:$16 sps:$4 sm:$0xff]  }
  0x6e   :  { %v4350_v43 = vld [vmem:[#allocation14 + $0x24] sm:$0xff]  ;;  %v3758_v59 = vld [vmem:[#allocation7 + $0x340] ss:$16 sps:$4 sm:$0xff]  }
  0x6f   :  { %1707 = vmatpush1.bf16.msra.mxu0 %v3651_v37  ;;  %1879 = vmatpush1.bf16.msra.mxu1 %v3652_v38  ;;  %v3736_v37 = vld [vmem:[#allocation7 + $0x2c4] ss:$16 sps:$4 sm:$0xff]   ;;  %v3739_v38 = vld [vmem:[#allocation7 + $0x2cc] ss:$16 sps:$4 sm:$0xff]   ;;  %v3749_v52 = vld [vmem:[#allocation7 + $0x308] ss:$16 sps:$4 sm:$0xff]  }
  0x70   :  { %1708 = vmatprep.subr.bf16.mxu0 %v3653_v40  ;;  %1880 = vmatprep.subr.bf16.mxu1 %v3655_v41  ;;  %v3734_v40 = vld [vmem:[#allocation7 + $0x2c0] ss:$16 sps:$4 sm:$0xff]   ;;  %v3737_v41 = vld [vmem:[#allocation7 + $0x2c8] ss:$16 sps:$4 sm:$0xff]   ;;  %v3754_v53 = vld [vmem:[#allocation7 + $0x324] ss:$16 sps:$4 sm:$0xff]  }
  0x71   :  { %v3755_v56 = vld [vmem:[#allocation7 + $0x328] ss:$16 sps:$4 sm:$0xff]   ;;  %v3776_v7 = vld [vmem:[#allocation7 + $0x3a0] ss:$16 sps:$4 sm:$0xff]  }
  0x72   :  { %v3761_v60 = vld [vmem:[#allocation7 + $0x348] ss:$16 sps:$4 sm:$0xff]  }
  0x73   :  { %1709 = vmatpush1.bf16.msra.mxu0 %v3657_v42  ;;  %1881 = vmatpush1.bf16.msra.mxu1 %v3658_v44  ;;  %v4348_v42 = vld [vmem:[%s4601_s10 + $0x8] sm:$0xff]   ;;  %v3742_v44 = vld [vmem:[#allocation7 + $0x2e4] ss:$16 sps:$4 sm:$0xff]  }
  0x74   :  { %1710 = vmatprep.subr.bf16.mxu0 %v3659_v45  ;;  %1882 = vmatprep.subr.bf16.mxu1 %v3661_v46  ;;  %v3745_v45 = vld [vmem:[#allocation7 + $0x2ec] ss:$16 sps:$4 sm:$0xff]   ;;  %v3104_v46 = vcombine.high %v4348_v42, %v4350_v43 }
  0x77   :  { %1711 = vmatpush1.bf16.msra.mxu0 %v3663_v47  ;;  %1883 = vmatpush1.bf16.msra.mxu1 %v3664_v48  ;;  %v3740_v47 = vld [vmem:[#allocation7 + $0x2e0] ss:$16 sps:$4 sm:$0xff]   ;;  %v3743_v48 = vld [vmem:[#allocation7 + $0x2e8] ss:$16 sps:$4 sm:$0xff]  }
  0x78   :  { %1712 = vmatprep.subr.bf16.mxu0 %v3665_v50  ;;  %1884 = vmatprep.subr.bf16.mxu1 %v3667_v51  ;;  %v3751_v50 = vld [vmem:[#allocation7 + $0x30c] ss:$16 sps:$4 sm:$0xff]   ;;  %v3746_v51 = vld [vmem:[#allocation7 + $0x300] ss:$16 sps:$4 sm:$0xff]  }
  0x7b   :  { %1713 = vmatpush1.bf16.msra.mxu0 %v3669_v54  ;;  %1885 = vmatpush1.bf16.msra.mxu1 %v3670_v55  ;;  %v3757_v54 = vld [vmem:[#allocation7 + $0x32c] ss:$16 sps:$4 sm:$0xff]   ;;  %v3752_v55 = vld [vmem:[#allocation7 + $0x320] ss:$16 sps:$4 sm:$0xff]  }
  0x7c   :  { %1714 = vmatprep.subr.bf16.mxu0 %v3671_v57  ;;  %1886 = vmatprep.subr.bf16.mxu1 %v3673_v58  ;;  %v3760_v57 = vld [vmem:[#allocation7 + $0x344] ss:$16 sps:$4 sm:$0xff]   ;;  %v3763_v58 = vld [vmem:[#allocation7 + $0x34c] ss:$16 sps:$4 sm:$0xff]  }
  0x7f   :  { %1715 = vmatpush1.bf16.msra.mxu0 %v3675_v61  ;;  %1887 = vmatpush1.bf16.msra.mxu1 %v3676_v62  ;;  %v3766_v61 = vld [vmem:[#allocation7 + $0x364] ss:$16 sps:$4 sm:$0xff]   ;;  %v3769_v62 = vld [vmem:[#allocation7 + $0x36c] ss:$16 sps:$4 sm:$0xff]  }
  0x80   :  { %1716 = vmatprep.subr.bf16.mxu0 %v3677_v63  ;;  %1888 = vmatprep.subr.bf16.mxu1 %v3679_v0  ;;  %v3764_v63 = vld [vmem:[#allocation7 + $0x360] ss:$16 sps:$4 sm:$0xff]   ;;  %v3767_v0 = vld [vmem:[#allocation7 + $0x368] ss:$16 sps:$4 sm:$0xff]  }
  0x83   :  { %1717 = vmatpush1.bf16.msra.mxu0 %v3681_v2  ;;  %1889 = vmatpush1.bf16.msra.mxu1 %v3682_v3  ;;  %v3772_v2 = vld [vmem:[#allocation7 + $0x384] ss:$16 sps:$4 sm:$0xff]   ;;  %v3775_v3 = vld [vmem:[#allocation7 + $0x38c] ss:$16 sps:$4 sm:$0xff]  }
  0x84   :  { %1718 = vmatprep.subr.bf16.mxu0 %v3683_v4  ;;  %1890 = vmatprep.subr.bf16.mxu1 %v3685_v5  ;;  %v3770_v4 = vld [vmem:[#allocation7 + $0x380] ss:$16 sps:$4 sm:$0xff]   ;;  %v3773_v5 = vld [vmem:[#allocation7 + $0x388] ss:$16 sps:$4 sm:$0xff]  }
  0x87   :  { %1719 = vmatpush1.bf16.msra.mxu0 %v3687_v6  ;;  %1891 = vmatpush1.bf16.msra.mxu1 %v3688_v1  ;;  %v3778_v6 = vld [vmem:[#allocation7 + $0x3a4] ss:$16 sps:$4 sm:$0xff]   ;;  %v3781_v1 = vld [vmem:[#allocation7 + $0x3ac] ss:$16 sps:$4 sm:$0xff]  }
  0x88   :  { %1720 = vmatprep.subr.bf16.mxu0 %v3689_v8  ;;  %1892 = vmatprep.subr.bf16.mxu1 %v3691_v9  ;;  %v3779_v8 = vld [vmem:[#allocation7 + $0x3a8] ss:$16 sps:$4 sm:$0xff]   ;;  %v3784_v9 = vld [vmem:[#allocation7 + $0x3c4] ss:$16 sps:$4 sm:$0xff]  }
  0x8b   :  { %1721 = vmatpush1.bf16.msra.mxu0 %v3693_v10  ;;  %1893 = vmatpush1.bf16.msra.mxu1 %v3694_v11  ;;  %v3787_v10 = vld [vmem:[#allocation7 + $0x3cc] ss:$16 sps:$4 sm:$0xff]   ;;  %v3782_v11 = vld [vmem:[#allocation7 + $0x3c0] ss:$16 sps:$4 sm:$0xff]  }
  0x8c   :  { %1733 = vmatprep.subr.bf16.mxu0 %v3700_v12  ;;  %1905 = vmatprep.subr.bf16.mxu1 %v3703_v13  ;;  %v3785_v12 = vld [vmem:[#allocation7 + $0x3c8] ss:$16 sps:$4 sm:$0xff]   ;;  %v3790_v13 = vld [vmem:[#allocation7 + $0x3e4] ss:$16 sps:$4 sm:$0xff]  }
  0x8e   :  { %1723 = vmatmul.mubr.bf16.vlgmr.msra.gmra.mrb[0].mxu0 %v3695_v14  ;;  %1895 = vmatmul.mubr.bf16.vlgmr.msra.gmra.mrb[0].mxu1 %v3695_v14  ;;  %v3793_v14 = vld [vmem:[#allocation7 + $0x3ec] ss:$16 sps:$4 sm:$0xff]  }
  0x8f   :  { %1734 = vmatpush1.bf16.msra.mxu0 %v3698_v15  ;;  %1906 = vmatpush1.bf16.msra.mxu1 %v3701_v16  ;;  %v3788_v15 = vld [vmem:[#allocation7 + $0x3e0] ss:$16 sps:$4 sm:$0xff]   ;;  %v3791_v16 = vld [vmem:[#allocation7 + $0x3e8] ss:$16 sps:$4 sm:$0xff]  }
  0x90   :  { %1735 = vmatprep.subr.bf16.mxu0 %v3706_v17  ;;  %1907 = vmatprep.subr.bf16.mxu1 %v3709_v18  ;;  %v3797_v17 = vld [vmem:[#allocation7 + $0x404] ss:$16 sps:$4 sm:$0xff]   ;;  %v3800_v18 = vld [vmem:[#allocation7 + $0x40c] ss:$16 sps:$4 sm:$0xff]  }
  0x91   :  { %1765 = vmatprep.mubr.bf16.mxu0 %v3104_v46  ;;  %1937 = vmatprep.mubr.bf16.mxu1 %v3104_v46  ;;  %v3833_v46 = vld [vmem:[#allocation7 + $0x4c4] ss:$16 sps:$4 sm:$0xff]  }
  0x93   :  { %1736 = vmatpush1.bf16.msra.mxu0 %v3704_v19  ;;  %1908 = vmatpush1.bf16.msra.mxu1 %v3707_v20  ;;  %v3103_v19 = vcombine.low %v4348_v42, %v4350_v43  ;;  %v3795_v20 = vld [vmem:[#allocation7 + $0x400] ss:$16 sps:$4 sm:$0xff]   ;;  %v3827_v42 = vld [vmem:[#allocation7 + $0x4a4] ss:$16 sps:$4 sm:$0xff]   ;;  %v3830_v43 = vld [vmem:[#allocation7 + $0x4ac] ss:$16 sps:$4 sm:$0xff]  }
  0x94   :  { %1737 = vmatprep.subr.bf16.mxu0 %v3712_v21  ;;  %1909 = vmatprep.subr.bf16.mxu1 %v3715_v22  ;;  %v3798_v21 = vld [vmem:[#allocation7 + $0x408] ss:$16 sps:$4 sm:$0xff]   ;;  %v3803_v22 = vld [vmem:[#allocation7 + $0x424] ss:$16 sps:$4 sm:$0xff]  }
  0x97   :  { %1738 = vmatpush1.bf16.msra.mxu0 %v3710_v23  ;;  %1910 = vmatpush1.bf16.msra.mxu1 %v3713_v24  ;;  %v3806_v23 = vld [vmem:[#allocation7 + $0x42c] ss:$16 sps:$4 sm:$0xff]   ;;  %v3801_v24 = vld [vmem:[#allocation7 + $0x420] ss:$16 sps:$4 sm:$0xff]  }
  0x98   :  { %1739 = vmatprep.subr.bf16.mxu0 %v3718_v25  ;;  %1911 = vmatprep.subr.bf16.mxu1 %v3721_v26  ;;  %v3804_v25 = vld [vmem:[#allocation7 + $0x428] ss:$16 sps:$4 sm:$0xff]   ;;  %v4359_v26 = vld [vmem:[%s4601_s10 + $0x10] sm:$0xff]  }
  0x9b   :  { %1740 = vmatpush1.bf16.msra.mxu0 %v3716_v27  ;;  %1912 = vmatpush1.bf16.msra.mxu1 %v3719_v28  ;;  %v4361_v27 = vld [vmem:[#allocation14 + $0x2c] sm:$0xff]  ;;  %v3809_v28 = vld [vmem:[#allocation7 + $0x444] ss:$16 sps:$4 sm:$0xff]  }
  0x9c   :  { %1741 = vmatprep.subr.bf16.mxu0 %v3724_v29  ;;  %1913 = vmatprep.subr.bf16.mxu1 %v3727_v30  ;;  %v3812_v29 = vld [vmem:[#allocation7 + $0x44c] ss:$16 sps:$4 sm:$0xff]   ;;  %v3106_v30 = vcombine.high %v4359_v26, %v4361_v27 }
  0x9f   :  { %1742 = vmatpush1.bf16.msra.mxu0 %v3722_v31  ;;  %1914 = vmatpush1.bf16.msra.mxu1 %v3725_v32  ;;  %v3807_v31 = vld [vmem:[#allocation7 + $0x440] ss:$16 sps:$4 sm:$0xff]   ;;  %v3810_v32 = vld [vmem:[#allocation7 + $0x448] ss:$16 sps:$4 sm:$0xff]  }
  0xa0   :  { %1743 = vmatprep.subr.bf16.mxu0 %v3730_v33  ;;  %1915 = vmatprep.subr.bf16.mxu1 %v3733_v34  ;;  %v3815_v33 = vld [vmem:[#allocation7 + $0x464] ss:$16 sps:$4 sm:$0xff]   ;;  %v3818_v34 = vld [vmem:[#allocation7 + $0x46c] ss:$16 sps:$4 sm:$0xff]  }
  0xa3   :  { %1744 = vmatpush1.bf16.msra.mxu0 %v3728_v35  ;;  %1916 = vmatpush1.bf16.msra.mxu1 %v3731_v36  ;;  %v3813_v35 = vld [vmem:[#allocation7 + $0x460] ss:$16 sps:$4 sm:$0xff]   ;;  %v3816_v36 = vld [vmem:[#allocation7 + $0x468] ss:$16 sps:$4 sm:$0xff]  }
  0xa4   :  { %1745 = vmatprep.subr.bf16.mxu0 %v3736_v37  ;;  %1917 = vmatprep.subr.bf16.mxu1 %v3739_v38  ;;  %v3821_v37 = vld [vmem:[#allocation7 + $0x484] ss:$16 sps:$4 sm:$0xff]   ;;  %v3824_v38 = vld [vmem:[#allocation7 + $0x48c] ss:$16 sps:$4 sm:$0xff]  }
  0xa7   :  { %1746 = vmatpush1.bf16.msra.mxu0 %v3734_v40  ;;  %1918 = vmatpush1.bf16.msra.mxu1 %v3737_v41  ;;  %v3819_v40 = vld [vmem:[#allocation7 + $0x480] ss:$16 sps:$4 sm:$0xff]   ;;  %v3822_v41 = vld [vmem:[#allocation7 + $0x488] ss:$16 sps:$4 sm:$0xff]  }
  0xa8   :  { %1747 = vmatprep.subr.bf16.mxu0 %v3742_v44  ;;  %1919 = vmatprep.subr.bf16.mxu1 %v3745_v45  ;;  %v3825_v44 = vld [vmem:[#allocation7 + $0x4a0] ss:$16 sps:$4 sm:$0xff]   ;;  %v3828_v45 = vld [vmem:[#allocation7 + $0x4a8] ss:$16 sps:$4 sm:$0xff]  }
  0xab   :  { %1748 = vmatpush1.bf16.msra.mxu0 %v3740_v47  ;;  %1920 = vmatpush1.bf16.msra.mxu1 %v3743_v48  ;;  %v3836_v47 = vld [vmem:[#allocation7 + $0x4cc] ss:$16 sps:$4 sm:$0xff]   ;;  %v3831_v48 = vld [vmem:[#allocation7 + $0x4c0] ss:$16 sps:$4 sm:$0xff]  }
  0xac   :  { %1749 = vmatprep.subr.bf16.mxu0 %v3748_v49  ;;  %1921 = vmatprep.subr.bf16.mxu1 %v3751_v50  ;;  %v3834_v49 = vld [vmem:[#allocation7 + $0x4c8] ss:$16 sps:$4 sm:$0xff]   ;;  %v3839_v50 = vld [vmem:[#allocation7 + $0x4e4] ss:$16 sps:$4 sm:$0xff]  }
  0xaf   :  { %1750 = vmatpush1.bf16.msra.mxu0 %v3746_v51  ;;  %1922 = vmatpush1.bf16.msra.mxu1 %v3749_v52  ;;  %v3842_v51 = vld [vmem:[#allocation7 + $0x4ec] ss:$16 sps:$4 sm:$0xff]   ;;  %v3837_v52 = vld [vmem:[#allocation7 + $0x4e0] ss:$16 sps:$4 sm:$0xff]  }
  0xb0   :  { %1751 = vmatprep.subr.bf16.mxu0 %v3754_v53  ;;  %1923 = vmatprep.subr.bf16.mxu1 %v3757_v54  ;;  %v3840_v53 = vld [vmem:[#allocation7 + $0x4e8] ss:$16 sps:$4 sm:$0xff]   ;;  %v3845_v54 = vld [vmem:[#allocation7 + $0x504] ss:$16 sps:$4 sm:$0xff]  }
  0xb3   :  { %1752 = vmatpush1.bf16.msra.mxu0 %v3752_v55  ;;  %1924 = vmatpush1.bf16.msra.mxu1 %v3755_v56  ;;  %v3848_v55 = vld [vmem:[#allocation7 + $0x50c] ss:$16 sps:$4 sm:$0xff]   ;;  %v3843_v56 = vld [vmem:[#allocation7 + $0x500] ss:$16 sps:$4 sm:$0xff]  }
  0xb4   :  { %1753 = vmatprep.subr.bf16.mxu0 %v3760_v57  ;;  %1925 = vmatprep.subr.bf16.mxu1 %v3763_v58  ;;  %v3846_v57 = vld [vmem:[#allocation7 + $0x508] ss:$16 sps:$4 sm:$0xff]   ;;  %v3851_v58 = vld [vmem:[#allocation7 + $0x524] ss:$16 sps:$4 sm:$0xff]  }
  0xb7   :  { %1754 = vmatpush1.bf16.msra.mxu0 %v3758_v59  ;;  %1926 = vmatpush1.bf16.msra.mxu1 %v3761_v60  ;;  %v3854_v59 = vld [vmem:[#allocation7 + $0x52c] ss:$16 sps:$4 sm:$0xff]   ;;  %v3849_v60 = vld [vmem:[#allocation7 + $0x520] ss:$16 sps:$4 sm:$0xff]  }
  0xb8   :  { %1755 = vmatprep.subr.bf16.mxu0 %v3766_v61  ;;  %1927 = vmatprep.subr.bf16.mxu1 %v3769_v62  ;;  %v3852_v61 = vld [vmem:[#allocation7 + $0x528] ss:$16 sps:$4 sm:$0xff]   ;;  %v3857_v62 = vld [vmem:[#allocation7 + $0x544] ss:$16 sps:$4 sm:$0xff]  }
  0xbb   :  { %1756 = vmatpush1.bf16.msra.mxu0 %v3764_v63  ;;  %1928 = vmatpush1.bf16.msra.mxu1 %v3767_v0  ;;  %v3860_v63 = vld [vmem:[#allocation7 + $0x54c] ss:$16 sps:$4 sm:$0xff]   ;;  %v3855_v0 = vld [vmem:[#allocation7 + $0x540] ss:$16 sps:$4 sm:$0xff]  }
  0xbc   :  { %1757 = vmatprep.subr.bf16.mxu0 %v3772_v2  ;;  %1929 = vmatprep.subr.bf16.mxu1 %v3775_v3  ;;  %v3858_v2 = vld [vmem:[#allocation7 + $0x548] ss:$16 sps:$4 sm:$0xff]   ;;  %v3863_v3 = vld [vmem:[#allocation7 + $0x564] ss:$16 sps:$4 sm:$0xff]  }
  0xbf   :  { %1758 = vmatpush1.bf16.msra.mxu0 %v3770_v4  ;;  %1930 = vmatpush1.bf16.msra.mxu1 %v3773_v5  ;;  %v3866_v4 = vld [vmem:[#allocation7 + $0x56c] ss:$16 sps:$4 sm:$0xff]   ;;  %v3861_v5 = vld [vmem:[#allocation7 + $0x560] ss:$16 sps:$4 sm:$0xff]  }
  0xc0   :  { %1759 = vmatprep.subr.bf16.mxu0 %v3778_v6  ;;  %1931 = vmatprep.subr.bf16.mxu1 %v3781_v1  ;;  %v3864_v6 = vld [vmem:[#allocation7 + $0x568] ss:$16 sps:$4 sm:$0xff]   ;;  %v3869_v1 = vld [vmem:[#allocation7 + $0x584] ss:$16 sps:$4 sm:$0xff]  }
  0xc3   :  { %1760 = vmatpush1.bf16.msra.mxu0 %v3776_v7  ;;  %1932 = vmatpush1.bf16.msra.mxu1 %v3779_v8  ;;  %v3872_v7 = vld [vmem:[#allocation7 + $0x58c] ss:$16 sps:$4 sm:$0xff]   ;;  %v3867_v8 = vld [vmem:[#allocation7 + $0x580] ss:$16 sps:$4 sm:$0xff]  }
  0xc4   :  { %1761 = vmatprep.subr.bf16.mxu0 %v3784_v9  ;;  %1933 = vmatprep.subr.bf16.mxu1 %v3787_v10  ;;  %v3870_v9 = vld [vmem:[#allocation7 + $0x588] ss:$16 sps:$4 sm:$0xff]   ;;  %v3875_v10 = vld [vmem:[#allocation7 + $0x5a4] ss:$16 sps:$4 sm:$0xff]  }
  0xc7   :  { %1762 = vmatpush1.bf16.msra.mxu0 %v3782_v11  ;;  %1934 = vmatpush1.bf16.msra.mxu1 %v3785_v12  ;;  %v3878_v11 = vld [vmem:[#allocation7 + $0x5ac] ss:$16 sps:$4 sm:$0xff]   ;;  %v3873_v12 = vld [vmem:[#allocation7 + $0x5a0] ss:$16 sps:$4 sm:$0xff]  }
  0xc8   :  { %1763 = vmatprep.subr.bf16.mxu0 %v3790_v13  ;;  %1935 = vmatprep.subr.bf16.mxu1 %v3793_v14  ;;  %v3876_v13 = vld [vmem:[#allocation7 + $0x5a8] ss:$16 sps:$4 sm:$0xff]   ;;  %v3881_v14 = vld [vmem:[#allocation7 + $0x5c4] ss:$16 sps:$4 sm:$0xff]  }
  0xcb   :  { %1764 = vmatpush1.bf16.msra.mxu0 %v3788_v15  ;;  %1936 = vmatpush1.bf16.msra.mxu1 %v3791_v16  ;;  %v3884_v15 = vld [vmem:[#allocation7 + $0x5cc] ss:$16 sps:$4 sm:$0xff]   ;;  %v3879_v16 = vld [vmem:[#allocation7 + $0x5c0] ss:$16 sps:$4 sm:$0xff]  }
  0xcc   :  { %1776 = vmatprep.subr.bf16.mxu0 %v3797_v17  ;;  %1948 = vmatprep.subr.bf16.mxu1 %v3800_v18  ;;  %v3882_v17 = vld [vmem:[#allocation7 + $0x5c8] ss:$16 sps:$4 sm:$0xff]   ;;  %v3887_v18 = vld [vmem:[#allocation7 + $0x5e4] ss:$16 sps:$4 sm:$0xff]  }
  0xce   :  { %1766 = vmatmul.mubr.bf16.vlgmr.msra.gmra.mrb[0].mxu0 %v3103_v19  ;;  %1938 = vmatmul.mubr.bf16.vlgmr.msra.gmra.mrb[0].mxu1 %v3103_v19  ;;  %v3890_v19 = vld [vmem:[#allocation7 + $0x5ec] ss:$16 sps:$4 sm:$0xff]  }
  0xcf   :  { %1777 = vmatpush1.bf16.msra.mxu0 %v3795_v20  ;;  %1949 = vmatpush1.bf16.msra.mxu1 %v3798_v21  ;;  %v3885_v20 = vld [vmem:[#allocation7 + $0x5e0] ss:$16 sps:$4 sm:$0xff]   ;;  %v3888_v21 = vld [vmem:[#allocation7 + $0x5e8] ss:$16 sps:$4 sm:$0xff]  }
  0xd0   :  { %1778 = vmatprep.subr.bf16.mxu0 %v3803_v22  ;;  %1950 = vmatprep.subr.bf16.mxu1 %v3806_v23  ;;  %v3894_v22 = vld [vmem:[#allocation7 + $0x604] ss:$16 sps:$4 sm:$0xff]   ;;  %v3897_v23 = vld [vmem:[#allocation7 + $0x60c] ss:$16 sps:$4 sm:$0xff]  }
  0xd1   :  { %1808 = vmatprep.mubr.bf16.mxu0 %v3106_v30  ;;  %1980 = vmatprep.mubr.bf16.mxu1 %v3106_v30  ;;  %v3903_v30 = vld [vmem:[#allocation7 + $0x62c] ss:$16 sps:$4 sm:$0xff]  }
  0xd3   :  { %1779 = vmatpush1.bf16.msra.mxu0 %v3801_v24  ;;  %1951 = vmatpush1.bf16.msra.mxu1 %v3804_v25  ;;  %v3892_v24 = vld [vmem:[#allocation7 + $0x600] ss:$16 sps:$4 sm:$0xff]   ;;  %v3895_v25 = vld [vmem:[#allocation7 + $0x608] ss:$16 sps:$4 sm:$0xff]  }
  0xd4   :  { %1780 = vmatprep.subr.bf16.mxu0 %v3809_v28  ;;  %1952 = vmatprep.subr.bf16.mxu1 %v3812_v29  ;;  %v3105_v28 = vcombine.low %v4359_v26, %v4361_v27  ;;  %v3900_v29 = vld [vmem:[#allocation7 + $0x624] ss:$16 sps:$4 sm:$0xff]   ;;  %v3915_v27 = vld [vmem:[#allocation7 + $0x66c] ss:$16 sps:$4 sm:$0xff]  }
  0xd5   :  { %v3912_v26 = vld [vmem:[#allocation7 + $0x664] ss:$16 sps:$4 sm:$0xff]  }
  0xd7   :  { %1781 = vmatpush1.bf16.msra.mxu0 %v3807_v31  ;;  %1953 = vmatpush1.bf16.msra.mxu1 %v3810_v32  ;;  %v3898_v31 = vld [vmem:[#allocation7 + $0x620] ss:$16 sps:$4 sm:$0xff]   ;;  %v3901_v32 = vld [vmem:[#allocation7 + $0x628] ss:$16 sps:$4 sm:$0xff]  }
  0xd8   :  { %1782 = vmatprep.subr.bf16.mxu0 %v3815_v33  ;;  %1954 = vmatprep.subr.bf16.mxu1 %v3818_v34  ;;  %v3906_v33 = vld [vmem:[#allocation7 + $0x644] ss:$16 sps:$4 sm:$0xff]   ;;  %v3909_v34 = vld [vmem:[#allocation7 + $0x64c] ss:$16 sps:$4 sm:$0xff]  }
  0xdb   :  { %1783 = vmatpush1.bf16.msra.mxu0 %v3813_v35  ;;  %1955 = vmatpush1.bf16.msra.mxu1 %v3816_v36  ;;  %v3904_v35 = vld [vmem:[#allocation7 + $0x640] ss:$16 sps:$4 sm:$0xff]   ;;  %v3907_v36 = vld [vmem:[#allocation7 + $0x648] ss:$16 sps:$4 sm:$0xff]  }
  0xdc   :  { %1784 = vmatprep.subr.bf16.mxu0 %v3821_v37  ;;  %1956 = vmatprep.subr.bf16.mxu1 %v3824_v38  ;;  %v4213_v37 = vmov 0   ;;  %v3910_v38 = vld [vmem:[#allocation7 + $0x660] ss:$16 sps:$4 sm:$0xff]  }
  0xdf   :  { %1785 = vmatpush1.bf16.msra.mxu0 %v3819_v40  ;;  %1957 = vmatpush1.bf16.msra.mxu1 %v3822_v41  ;;  %v3913_v40 = vld [vmem:[#allocation7 + $0x668] ss:$16 sps:$4 sm:$0xff]   ;;  %v3918_v41 = vld [vmem:[#allocation7 + $0x684] ss:$16 sps:$4 sm:$0xff]  }
  0xe0   :  { %1786 = vmatprep.subr.bf16.mxu0 %v3827_v42  ;;  %1958 = vmatprep.subr.bf16.mxu1 %v3830_v43  ;;  %v3921_v42 = vld [vmem:[#allocation7 + $0x68c] ss:$16 sps:$4 sm:$0xff]   ;;  %v3916_v43 = vld [vmem:[#allocation7 + $0x680] ss:$16 sps:$4 sm:$0xff]  }
  0xe3   :  { %1787 = vmatpush1.bf16.msra.mxu0 %v3825_v44  ;;  %1959 = vmatpush1.bf16.msra.mxu1 %v3828_v45  ;;  %v3919_v44 = vld [vmem:[#allocation7 + $0x688] ss:$16 sps:$4 sm:$0xff]   ;;  %v3924_v45 = vld [vmem:[#allocation7 + $0x6a4] ss:$16 sps:$4 sm:$0xff]  }
  0xe4   :  { %1788 = vmatprep.subr.bf16.mxu0 %v3833_v46  ;;  %1960 = vmatprep.subr.bf16.mxu1 %v3836_v47  ;;  %v3927_v46 = vld [vmem:[#allocation7 + $0x6ac] ss:$16 sps:$4 sm:$0xff]   ;;  %v3922_v47 = vld [vmem:[#allocation7 + $0x6a0] ss:$16 sps:$4 sm:$0xff]  }
  0xe7   :  { %1789 = vmatpush1.bf16.msra.mxu0 %v3831_v48  ;;  %1961 = vmatpush1.bf16.msra.mxu1 %v3834_v49  ;;  %v3925_v48 = vld [vmem:[#allocation7 + $0x6a8] ss:$16 sps:$4 sm:$0xff]   ;;  %v3930_v49 = vld [vmem:[#allocation7 + $0x6c4] ss:$16 sps:$4 sm:$0xff]  }
  0xe8   :  { %1790 = vmatprep.subr.bf16.mxu0 %v3839_v50  ;;  %1962 = vmatprep.subr.bf16.mxu1 %v3842_v51  ;;  %v3933_v50 = vld [vmem:[#allocation7 + $0x6cc] ss:$16 sps:$4 sm:$0xff]   ;;  %v3928_v51 = vld [vmem:[#allocation7 + $0x6c0] ss:$16 sps:$4 sm:$0xff]  }
  0xeb   :  { %1791 = vmatpush1.bf16.msra.mxu0 %v3837_v52  ;;  %1963 = vmatpush1.bf16.msra.mxu1 %v3840_v53  ;;  %v3931_v52 = vld [vmem:[#allocation7 + $0x6c8] ss:$16 sps:$4 sm:$0xff]   ;;  %v3936_v53 = vld [vmem:[#allocation7 + $0x6e4] ss:$16 sps:$4 sm:$0xff]  }
  0xec   :  { %1792 = vmatprep.subr.bf16.mxu0 %v3845_v54  ;;  %1964 = vmatprep.subr.bf16.mxu1 %v3848_v55  ;;  %v3939_v54 = vld [vmem:[#allocation7 + $0x6ec] ss:$16 sps:$4 sm:$0xff]   ;;  %v3934_v55 = vld [vmem:[#allocation7 + $0x6e0] ss:$16 sps:$4 sm:$0xff]  }
  0xef   :  { %1793 = vmatpush1.bf16.msra.mxu0 %v3843_v56  ;;  %1965 = vmatpush1.bf16.msra.mxu1 %v3846_v57  ;;  %v3937_v56 = vld [vmem:[#allocation7 + $0x6e8] ss:$16 sps:$4 sm:$0xff]   ;;  %v3943_v57 = vld [vmem:[%s4593_s2 + $0x4] ss:$8 sps:$4 sm:$0xff]  }
  0xf0   :  { %1794 = vmatprep.subr.bf16.mxu0 %v3851_v58  ;;  %1966 = vmatprep.subr.bf16.mxu1 %v3854_v59  ;;  %v3940_v58 = vld [vmem:[#allocation14 + $0x18] ss:$28 sps:$4 sm:$0xff]   ;;  %v3941_v59 = vld [vmem:[%s4593_s2] ss:$8 sps:$4 sm:$0xff]  }
  0xf3   :  { %1795 = vmatpush1.bf16.msra.mxu0 %v3849_v60  ;;  %1967 = vmatpush1.bf16.msra.mxu1 %v3852_v61  ;;  %v3946_v60 = vld [vmem:[%s4593_s2 + $0x14] ss:$8 sps:$4 sm:$0xff]   ;;  %v3944_v61 = vld [vmem:[%s4593_s2 + $0x10] ss:$8 sps:$4 sm:$0xff]  }
  0xf4   :  { %1796 = vmatprep.subr.bf16.mxu0 %v3857_v62  ;;  %1968 = vmatprep.subr.bf16.mxu1 %v3860_v63  ;;  %v3949_v62 = vld [vmem:[%s4593_s2 + $0x24] ss:$8 sps:$4 sm:$0xff]   ;;  %v3947_v63 = vld [vmem:[%s4593_s2 + $0x20] ss:$8 sps:$4 sm:$0xff]  }
  0xf7   :  { %1797 = vmatpush1.bf16.msra.mxu0 %v3855_v0  ;;  %1969 = vmatpush1.bf16.msra.mxu1 %v3858_v2  ;;  %v3952_v0 = vld [vmem:[%s4593_s2 + $0x34] ss:$8 sps:$4 sm:$0xff]   ;;  %v3950_v2 = vld [vmem:[%s4593_s2 + $0x30] ss:$8 sps:$4 sm:$0xff]  }
  0xf8   :  { %1798 = vmatprep.subr.bf16.mxu0 %v3863_v3  ;;  %1970 = vmatprep.subr.bf16.mxu1 %v3866_v4  ;;  %v3955_v3 = vld [vmem:[%s4593_s2 + $0x44] ss:$8 sps:$4 sm:$0xff]   ;;  %v3953_v4 = vld [vmem:[%s4593_s2 + $0x40] ss:$8 sps:$4 sm:$0xff]  }
  0xfb   :  { %1799 = vmatpush1.bf16.msra.mxu0 %v3861_v5  ;;  %1971 = vmatpush1.bf16.msra.mxu1 %v3864_v6  ;;  %v3958_v5 = vld [vmem:[%s4593_s2 + $0x54] ss:$8 sps:$4 sm:$0xff]   ;;  %v3956_v6 = vld [vmem:[%s4593_s2 + $0x50] ss:$8 sps:$4 sm:$0xff]  }
  0xfc   :  { %1800 = vmatprep.subr.bf16.mxu0 %v3869_v1  ;;  %1972 = vmatprep.subr.bf16.mxu1 %v3872_v7  ;;  %v3961_v1 = vld [vmem:[%s4593_s2 + $0x64] ss:$8 sps:$4 sm:$0xff]   ;;  %v3959_v7 = vld [vmem:[%s4593_s2 + $0x60] ss:$8 sps:$4 sm:$0xff]  }
  0xff   :  { %1801 = vmatpush1.bf16.msra.mxu0 %v3867_v8  ;;  %1973 = vmatpush1.bf16.msra.mxu1 %v3870_v9  ;;  %v3964_v8 = vld [vmem:[%s4593_s2 + $0x74] ss:$8 sps:$4 sm:$0xff]   ;;  %v3962_v9 = vld [vmem:[%s4593_s2 + $0x70] ss:$8 sps:$4 sm:$0xff]  }
 0x100   :  { %1802 = vmatprep.subr.bf16.mxu0 %v3875_v10  ;;  %1974 = vmatprep.subr.bf16.mxu1 %v3878_v11  ;;  %v3967_v10 = vld [vmem:[%s4593_s2 + $0x84] ss:$8 sps:$4 sm:$0xff]   ;;  %v3965_v11 = vld [vmem:[%s4593_s2 + $0x80] ss:$8 sps:$4 sm:$0xff]  }
 0x103   :  { %1803 = vmatpush1.bf16.msra.mxu0 %v3873_v12  ;;  %1975 = vmatpush1.bf16.msra.mxu1 %v3876_v13  ;;  %v3970_v12 = vld [vmem:[%s4593_s2 + $0x94] ss:$8 sps:$4 sm:$0xff]   ;;  %v3968_v13 = vld [vmem:[%s4593_s2 + $0x90] ss:$8 sps:$4 sm:$0xff]  }
 0x104   :  { %1804 = vmatprep.subr.bf16.mxu0 %v3881_v14  ;;  %1976 = vmatprep.subr.bf16.mxu1 %v3884_v15  ;;  %v3973_v14 = vld [vmem:[%s4593_s2 + $0xa4] ss:$8 sps:$4 sm:$0xff]   ;;  %v3971_v15 = vld [vmem:[%s4593_s2 + $0xa0] ss:$8 sps:$4 sm:$0xff]  }
 0x107   :  { %1805 = vmatpush1.bf16.msra.mxu0 %v3879_v16  ;;  %1977 = vmatpush1.bf16.msra.mxu1 %v3882_v17  ;;  %v3976_v16 = vld [vmem:[%s4593_s2 + $0xb4] ss:$8 sps:$4 sm:$0xff]   ;;  %v3974_v17 = vld [vmem:[%s4593_s2 + $0xb0] ss:$8 sps:$4 sm:$0xff]  }
 0x108   :  { %1806 = vmatprep.subr.bf16.mxu0 %v3887_v18  ;;  %1978 = vmatprep.subr.bf16.mxu1 %v3890_v19  ;;  %v3979_v18 = vld [vmem:[%s4593_s2 + $0xc4] ss:$8 sps:$4 sm:$0xff]   ;;  %v3977_v19 = vld [vmem:[%s4593_s2 + $0xc0] ss:$8 sps:$4 sm:$0xff]  }
 0x10b   :  { %1807 = vmatpush1.bf16.msra.mxu0 %v3885_v20  ;;  %1979 = vmatpush1.bf16.msra.mxu1 %v3888_v21  ;;  %v3982_v20 = vld [vmem:[%s4593_s2 + $0xd4] ss:$8 sps:$4 sm:$0xff]   ;;  %v3980_v21 = vld [vmem:[%s4593_s2 + $0xd0] ss:$8 sps:$4 sm:$0xff]  }
 0x10c   :  { %1819 = vmatprep.subr.bf16.mxu0 %v3894_v22  ;;  %1991 = vmatprep.subr.bf16.mxu1 %v3897_v23  ;;  %v3985_v22 = vld [vmem:[%s4593_s2 + $0xe4] ss:$8 sps:$4 sm:$0xff]   ;;  %v3983_v23 = vld [vmem:[%s4593_s2 + $0xe0] ss:$8 sps:$4 sm:$0xff]  }
 0x10e   :  { %1809 = vmatmul.mubr.bf16.vlgmr.msra.gmra.mrb[0].mxu0 %v3105_v28  ;;  %1981 = vmatmul.mubr.bf16.vlgmr.msra.gmra.mrb[0].mxu1 %v3105_v28  ;;  %v3991_v28 = vld [vmem:[%s4593_s2 + $0x104] ss:$8 sps:$4 sm:$0xff]  }
 0x10f   :  { %1820 = vmatpush1.bf16.msra.mxu0 %v3892_v24  ;;  %1992 = vmatpush1.bf16.msra.mxu1 %v3895_v25  ;;  %v3988_v24 = vld [vmem:[%s4593_s2 + $0xf4] ss:$8 sps:$4 sm:$0xff]   ;;  %v3986_v25 = vld [vmem:[%s4593_s2 + $0xf0] ss:$8 sps:$4 sm:$0xff]  }
 0x110   :  { %1821 = vmatprep.subr.bf16.mxu0 %v3900_v29  ;;  %1993 = vmatprep.subr.bf16.mxu1 %v3903_v30  ;;  %v4037_v29 = vld [vmem:[#allocation9] ss:$8 sps:$4 sm:$0xff]   ;;  %v4039_v30 = vld [vmem:[#allocation9 + $0x4] ss:$8 sps:$4 sm:$0xff]  }
 0x111   :  { %1851 = vmatprep.mubr.bf16.mxu0 %v4213_v37  ;;  %2023 = vmatprep.mubr.bf16.mxu1 %v4213_v37  ;;  %v4051_v37 = vld [vmem:[#allocation9 + $0x44] ss:$8 sps:$4 sm:$0xff]  }
 0x113   :  { %1822 = vmatpush1.bf16.msra.mxu0 %v3898_v31  ;;  %1994 = vmatpush1.bf16.msra.mxu1 %v3901_v32  ;;  %v4042_v31 = vld [vmem:[#allocation9 + $0x14] ss:$8 sps:$4 sm:$0xff]   ;;  %v4040_v32 = vld [vmem:[#allocation9 + $0x10] ss:$8 sps:$4 sm:$0xff]  }
 0x114   :  { %1823 = vmatprep.subr.bf16.mxu0 %v3906_v33  ;;  %1995 = vmatprep.subr.bf16.mxu1 %v3909_v34  ;;  %v4045_v33 = vld [vmem:[#allocation9 + $0x24] ss:$8 sps:$4 sm:$0xff]   ;;  %v4043_v34 = vld [vmem:[#allocation9 + $0x20] ss:$8 sps:$4 sm:$0xff]  }
 0x117   :  { %1824 = vmatpush1.bf16.msra.mxu0 %v3904_v35  ;;  %1996 = vmatpush1.bf16.msra.mxu1 %v3907_v36  ;;  %v4048_v35 = vld [vmem:[#allocation9 + $0x34] ss:$8 sps:$4 sm:$0xff]   ;;  %v4046_v36 = vld [vmem:[#allocation9 + $0x30] ss:$8 sps:$4 sm:$0xff]  }
 0x118   :  { %1825 = vmatprep.subr.bf16.mxu0 %v3912_v26  ;;  %1997 = vmatprep.subr.bf16.mxu1 %v3915_v27  ;;  %v4049_v26 = vld [vmem:[#allocation9 + $0x40] ss:$8 sps:$4 sm:$0xff]   ;;  %v4054_v27 = vld [vmem:[#allocation9 + $0x54] ss:$8 sps:$4 sm:$0xff]  }
 0x11b   :  { %1826 = vmatpush1.bf16.msra.mxu0 %v3910_v38  ;;  %1998 = vmatpush1.bf16.msra.mxu1 %v3913_v40  ;;  %v4052_v38 = vld [vmem:[#allocation9 + $0x50] ss:$8 sps:$4 sm:$0xff]   ;;  %v4057_v40 = vld [vmem:[#allocation9 + $0x64] ss:$8 sps:$4 sm:$0xff]  }
 0x11c   :  { %1827 = vmatprep.subr.bf16.mxu0 %v3918_v41  ;;  %1999 = vmatprep.subr.bf16.mxu1 %v3921_v42  ;;  %v4055_v41 = vld [vmem:[#allocation9 + $0x60] ss:$8 sps:$4 sm:$0xff]   ;;  %v4060_v42 = vld [vmem:[#allocation9 + $0x74] ss:$8 sps:$4 sm:$0xff]  }
 0x11f   :  { %1828 = vmatpush1.bf16.msra.mxu0 %v3916_v43  ;;  %2000 = vmatpush1.bf16.msra.mxu1 %v3919_v44  ;;  %v4058_v43 = vld [vmem:[#allocation9 + $0x70] ss:$8 sps:$4 sm:$0xff]   ;;  %v4063_v44 = vld [vmem:[#allocation9 + $0x84] ss:$8 sps:$4 sm:$0xff]  }
 0x120   :  { %1829 = vmatprep.subr.bf16.mxu0 %v3924_v45  ;;  %2001 = vmatprep.subr.bf16.mxu1 %v3927_v46  ;;  %v4061_v45 = vld [vmem:[#allocation9 + $0x80] ss:$8 sps:$4 sm:$0xff]   ;;  %v4066_v46 = vld [vmem:[#allocation9 + $0x94] ss:$8 sps:$4 sm:$0xff]  }
 0x123   :  { %1830 = vmatpush1.bf16.msra.mxu0 %v3922_v47  ;;  %2002 = vmatpush1.bf16.msra.mxu1 %v3925_v48  ;;  %v4064_v47 = vld [vmem:[#allocation9 + $0x90] ss:$8 sps:$4 sm:$0xff]   ;;  %v4069_v48 = vld [vmem:[#allocation9 + $0xa4] ss:$8 sps:$4 sm:$0xff]  }
 0x124   :  { %1831 = vmatprep.subr.bf16.mxu0 %v3930_v49  ;;  %2003 = vmatprep.subr.bf16.mxu1 %v3933_v50  ;;  %v4067_v49 = vld [vmem:[#allocation9 + $0xa0] ss:$8 sps:$4 sm:$0xff]   ;;  %v4072_v50 = vld [vmem:[#allocation9 + $0xb4] ss:$8 sps:$4 sm:$0xff]  }
 0x127   :  { %1832 = vmatpush1.bf16.msra.mxu0 %v3928_v51  ;;  %2004 = vmatpush1.bf16.msra.mxu1 %v3931_v52  ;;  %v515_v51 = vshrl.u32 %v242_v39, 7  ;;  %v4070_v52 = vld [vmem:[#allocation9 + $0xb0] ss:$8 sps:$4 sm:$0xff]  }
 0x128   :  { %1833 = vmatprep.subr.bf16.mxu0 %v3936_v53  ;;  %2005 = vmatprep.subr.bf16.mxu1 %v3939_v54  ;;  %v4075_v53 = vld [vmem:[#allocation9 + $0xc4] ss:$8 sps:$4 sm:$0xff]  }
 0x129   :  { %v4467_v54 = vsub.s32 0, %v515_v51 }
 0x12b   :  { %1834 = vmatpush1.bf16.msra.mxu0 %v3934_v55  ;;  %2006 = vmatpush1.bf16.msra.mxu1 %v3937_v56  ;;  %v524_v55 = vsub.s32 2, %v515_v51  ;;  %v512_v56 = vld [vmem:[%s4592_s1] sm:$0xf] }
 0x12c   :  { %2442 = vmatprep.subr.bf16.mxu0 %v3943_v57  ;;  %2738 = vmatprep.subr.bf16.mxu1 %v4039_v30  ;;  %v4472_v57 = vsub.s32 1, %v515_v51  ;;  %v517_v39 = vrot.slane %v512_v56, %v4467_v54 }
 0x12e   :  { %1852 = vmatmul.mubr.bf16.vlgmr.msra.gmra.mrb[0].mxu0 %v3940_v58  ;;  %2024 = vmatmul.mubr.bf16.vlgmr.msra.gmra.mrb[0].mxu1 %v3940_v58  ;;  %v528_v58 = vsub.s32 3, %v515_v51  ;;  %v4024_v51 = vld [vmem:[%s4593_s2 + $0x1b4] ss:$8 sps:$4 sm:$0xff]  }
 0x12f   :  { %2443 = vmatpush1.bf16.msra.mxu0 %v3941_v59  ;;  %2739 = vmatpush1.bf16.msra.mxu1 %v4037_v29  ;;  %v4073_v59 = vld [vmem:[#allocation9 + $0xc0] ss:$8 sps:$4 sm:$0xff]  }
 0x130   :  { %2444 = vmatprep.subr.bf16.mxu0 %v3946_v60  ;;  %2740 = vmatprep.subr.bf16.mxu1 %v4042_v31  ;;  %v4078_v60 = vld [vmem:[#allocation9 + $0xd4] ss:$8 sps:$4 sm:$0xff]   ;;  %v3989_v31 = vld [vmem:[%s4593_s2 + $0x100] ss:$8 sps:$4 sm:$0xff]  }
 0x133   :  { %2445 = vmatpush1.bf16.msra.mxu0 %v3944_v61  ;;  %2741 = vmatpush1.bf16.msra.mxu1 %v4040_v32  ;;  %v525_v61 = vrot.slane %v512_v56, %v524_v55  ;;  %v3994_v32 = vld [vmem:[%s4593_s2 + $0x114] ss:$8 sps:$4 sm:$0xff]   ;;  %v4025_v55 = vld [vmem:[%s4593_s2 + $0x1c0] ss:$8 sps:$4 sm:$0xff]  }
 0x134   :  { %2446 = vmatprep.subr.bf16.mxu0 %v3949_v62  ;;  %2742 = vmatprep.subr.bf16.mxu1 %v4045_v33  ;;  %v521_v62 = vrot.slane %v512_v56, %v4472_v57  ;;  %v3992_v33 = vld [vmem:[%s4593_s2 + $0x110] ss:$8 sps:$4 sm:$0xff]  }
 0x137   :  { %2447 = vmatpush1.bf16.msra.mxu0 %v3947_v63  ;;  %2743 = vmatpush1.bf16.msra.mxu1 %v4043_v34  ;;  %v529_v63 = vrot.slane %v512_v56, %v528_v58  ;;  %v3997_v34 = vld [vmem:[%s4593_s2 + $0x124] ss:$8 sps:$4 sm:$0xff]   ;;  %v4030_v56 = vld [vmem:[%s4593_s2 + $0x1d4] ss:$8 sps:$4 sm:$0xff]   ;;  %v4028_v58 = vld [vmem:[%s4593_s2 + $0x1d0] ss:$8 sps:$4 sm:$0xff]  }
 0x138   :  { %2448 = vmatprep.subr.bf16.mxu0 %v3952_v0  ;;  %2744 = vmatprep.subr.bf16.mxu1 %v4048_v35  ;;  %v4076_v0 = vld [vmem:[#allocation9 + $0xd0] ss:$8 sps:$4 sm:$0xff]   ;;  %v3995_v35 = vld [vmem:[%s4593_s2 + $0x120] ss:$8 sps:$4 sm:$0xff]  }
 0x13b   :  { %2449 = vmatpush1.bf16.msra.mxu0 %v3950_v2  ;;  %2745 = vmatpush1.bf16.msra.mxu1 %v4046_v36  ;;  %v4000_v36 = vld [vmem:[%s4593_s2 + $0x134] ss:$8 sps:$4 sm:$0xff]  }
 0x13c   :  { %2450 = vmatprep.subr.bf16.mxu0 %v3955_v3  ;;  %2746 = vmatprep.subr.bf16.mxu1 %v4051_v37  ;;  %v3998_v37 = vld [vmem:[%s4593_s2 + $0x130] ss:$8 sps:$4 sm:$0xff]  }
 0x13f   :  { %2451 = vmatpush1.bf16.msra.mxu0 %v3953_v4  ;;  %2747 = vmatpush1.bf16.msra.mxu1 %v4049_v26  ;;  %v4003_v26 = vld [vmem:[%s4593_s2 + $0x144] ss:$8 sps:$4 sm:$0xff]  }
 0x140   :  { %2452 = vmatprep.subr.bf16.mxu0 %v3958_v5  ;;  %2748 = vmatprep.subr.bf16.mxu1 %v4054_v27  ;;  %v4001_v27 = vld [vmem:[%s4593_s2 + $0x140] ss:$8 sps:$4 sm:$0xff]  }
 0x143   :  { %2453 = vmatpush1.bf16.msra.mxu0 %v3956_v6  ;;  %2749 = vmatpush1.bf16.msra.mxu1 %v4052_v38  ;;  %v4006_v38 = vld [vmem:[%s4593_s2 + $0x154] ss:$8 sps:$4 sm:$0xff]  }
 0x144   :  { %2454 = vmatprep.subr.bf16.mxu0 %v3961_v1  ;;  %2750 = vmatprep.subr.bf16.mxu1 %v4057_v40  ;;  %v4004_v40 = vld [vmem:[%s4593_s2 + $0x150] ss:$8 sps:$4 sm:$0xff]  }
 0x147   :  { %2455 = vmatpush1.bf16.msra.mxu0 %v3959_v7  ;;  %2751 = vmatpush1.bf16.msra.mxu1 %v4055_v41  ;;  %v4009_v41 = vld [vmem:[%s4593_s2 + $0x164] ss:$8 sps:$4 sm:$0xff]  }
 0x148   :  { %2456 = vmatprep.subr.bf16.mxu0 %v3964_v8  ;;  %2752 = vmatprep.subr.bf16.mxu1 %v4060_v42  ;;  %v4007_v42 = vld [vmem:[%s4593_s2 + $0x160] ss:$8 sps:$4 sm:$0xff]  }
 0x14b   :  { %2457 = vmatpush1.bf16.msra.mxu0 %v3962_v9  ;;  %2753 = vmatpush1.bf16.msra.mxu1 %v4058_v43  ;;  %v4012_v43 = vld [vmem:[%s4593_s2 + $0x174] ss:$8 sps:$4 sm:$0xff]  }
 0x14c   :  { %2458 = vmatprep.subr.bf16.mxu0 %v3967_v10  ;;  %2754 = vmatprep.subr.bf16.mxu1 %v4063_v44  ;;  %v4010_v44 = vld [vmem:[%s4593_s2 + $0x170] ss:$8 sps:$4 sm:$0xff]  }
 0x14f   :  { %2459 = vmatpush1.bf16.msra.mxu0 %v3965_v11  ;;  %2755 = vmatpush1.bf16.msra.mxu1 %v4061_v45  ;;  %v4015_v45 = vld [vmem:[%s4593_s2 + $0x184] ss:$8 sps:$4 sm:$0xff]  }
 0x150   :  { %2460 = vmatprep.subr.bf16.mxu0 %v3970_v12  ;;  %2756 = vmatprep.subr.bf16.mxu1 %v4066_v46  ;;  %v4013_v46 = vld [vmem:[%s4593_s2 + $0x180] ss:$8 sps:$4 sm:$0xff]  }
 0x153   :  { %2461 = vmatpush1.bf16.msra.mxu0 %v3968_v13  ;;  %2757 = vmatpush1.bf16.msra.mxu1 %v4064_v47  ;;  %v4018_v47 = vld [vmem:[%s4593_s2 + $0x194] ss:$8 sps:$4 sm:$0xff]  }
 0x154   :  { %2462 = vmatprep.subr.bf16.mxu0 %v3973_v14  ;;  %2758 = vmatprep.subr.bf16.mxu1 %v4069_v48  ;;  %v4016_v48 = vld [vmem:[%s4593_s2 + $0x190] ss:$8 sps:$4 sm:$0xff]  }
 0x157   :  { %2463 = vmatpush1.bf16.msra.mxu0 %v3971_v15  ;;  %2759 = vmatpush1.bf16.msra.mxu1 %v4067_v49  ;;  %v4021_v49 = vld [vmem:[%s4593_s2 + $0x1a4] ss:$8 sps:$4 sm:$0xff]  }
 0x158   :  { %2464 = vmatprep.subr.bf16.mxu0 %v3976_v16  ;;  %2760 = vmatprep.subr.bf16.mxu1 %v4072_v50  ;;  %v4019_v50 = vld [vmem:[%s4593_s2 + $0x1a0] ss:$8 sps:$4 sm:$0xff]  }
 0x15b   :  { %2465 = vmatpush1.bf16.msra.mxu0 %v3974_v17  ;;  %2761 = vmatpush1.bf16.msra.mxu1 %v4070_v52  ;;  %v4022_v52 = vld [vmem:[%s4593_s2 + $0x1b0] ss:$8 sps:$4 sm:$0xff]  }
 0x15c   :  { %2466 = vmatprep.subr.bf16.mxu0 %v3979_v18  ;;  %2762 = vmatprep.subr.bf16.mxu1 %v4075_v53  ;;  %v4027_v53 = vld [vmem:[%s4593_s2 + $0x1c4] ss:$8 sps:$4 sm:$0xff]  }
 0x15f   :  { %2467 = vmatpush1.bf16.msra.mxu0 %v3977_v19  ;;  %2763 = vmatpush1.bf16.msra.mxu1 %v4073_v59  ;;  %v4033_v59 = vld [vmem:[%s4593_s2 + $0x1e4] ss:$8 sps:$4 sm:$0xff]  }
 0x160   :  { %2468 = vmatprep.subr.bf16.mxu0 %v3982_v20  ;;  %2764 = vmatprep.subr.bf16.mxu1 %v4078_v60  ;;  %v4031_v60 = vld [vmem:[%s4593_s2 + $0x1e0] ss:$8 sps:$4 sm:$0xff]  }
 0x163   :  { %2469 = vmatpush1.bf16.msra.mxu0 %v3980_v21  ;;  %2765 = vmatpush1.bf16.msra.mxu1 %v4076_v0  ;;  %v4084_v0 = vld [vmem:[#allocation9 + $0xf4] ss:$8 sps:$4 sm:$0xff]  }
 0x164   :  { %2470 = vmatprep.subr.bf16.mxu0 %v3985_v22 }
 0x167   :  { %2471 = vmatpush1.bf16.msra.mxu0 %v3983_v23 }
 0x168   :  { %2472 = vmatprep.subr.bf16.mxu0 %v3988_v24 }
 0x16b   :  { %2473 = vmatpush1.bf16.msra.mxu0 %v3986_v25 }
 0x16c   :  { %2485 = vmatprep.subr.bf16.mxu0 %v3991_v28 }
 0x201   :  { %v1853_v2 = vpop.f32.mrb[0].mxu0  ;;  %v2025_v3 = vpop.f32.mrb[0].mxu1 }
 0x202   :  { %v3546_v4 = vadd.f32 %v1853_v2, %v517_v39  ;;  %v3550_v5 = vadd.f32 %v2025_v3, %v525_v61  ;;  %v1855_v6 = vpop.f32.mrb[1].mxu0  ;;  %v2027_v1 = vpop.f32.mrb[1].mxu1  ;;  %v4082_v2 = vld [vmem:[#allocation9 + $0xf0] ss:$8 sps:$4 sm:$0xff]   ;;  %v4085_v3 = vld [vmem:[#allocation11 + $0x40] sm:$0xff]  }
 0x203   :  { %v3547_v7 = vadd.f32 %v1855_v6, %v521_v62  ;;  %v3551_v8 = vadd.f32 %v2027_v1, %v529_v63  ;;  %v1857_v9 = vpop.f32.mrb[2].mxu0  ;;  %v2029_v10 = vpop.f32.mrb[2].mxu1 }
 0x204   :  { %v3548_v11 = vadd.f32 %v1857_v9, %v517_v39  ;;  %v3552_v12 = vadd.f32 %v2029_v10, %v525_v61  ;;  %v1859_v13 = vpop.f32.mrb[3].mxu0  ;;  %v2031_v14 = vpop.f32.mrb[3].mxu1  ;;  %v2034_v17 = vmax.f32 %v3546_v4, 0.0  ;;  %v2036_v18 = vmax.f32 %v3550_v5, 0.0  ;;  %v4036_v39 = vld [vmem:[%s4593_s2 + $0x1f4] ss:$8 sps:$4 sm:$0xff]  }
 0x205   :  { %v3549_v15 = vadd.f32 %v1859_v13, %v521_v62  ;;  %v3553_v16 = vadd.f32 %v2031_v14, %v529_v63  ;;  %v2035_v21 = vmax.f32 %v3547_v7, 0.0  ;;  %v2037_v22 = vmax.f32 %v3551_v8, 0.0  ;;  %v4034_v61 = vld [vmem:[%s4593_s2 + $0x1f0] ss:$8 sps:$4 sm:$0xff]   ;;  %v4081_v62 = vld [vmem:[#allocation9 + $0xe4] ss:$8 sps:$4 sm:$0xff]  }
 0x206   :  { %v2038_v19 = vmax.f32 %v3548_v11, 0.0  ;;  %v2040_v20 = vmax.f32 %v3552_v12, 0.0  ;;  %v4079_v63 = vld [vmem:[#allocation9 + $0xe0] ss:$8 sps:$4 sm:$0xff]   ;;  %2766 = vmatprep.subr.bf16.mxu1 %v4081_v62 }
 0x207   :  { %v2039_v23 = vmax.f32 %v3549_v15, 0.0  ;;  %v2041_v24 = vmax.f32 %v3553_v16, 0.0  ;;  %2767 = vmatpush1.bf16.msra.mxu1 %v4079_v63  ;;  %v2110_v4 = vld [vmem:[%s4594_s3] sm:$0x3] }
 0x208   :  { %v2042_v25 = vpack.c.bf16 %v2038_v19, %v2034_v17  ;;  %v4476_v28 = vpack.c.bf16 %v2040_v20, %v2036_v18  ;;  %2768 = vmatprep.subr.bf16.mxu1 %v4084_v0  ;;  %v2115_v5 = vrot.slane %v2110_v4, %v4467_v54  ;;  %v2119_v6 = vrot.slane %v2110_v4, %v4472_v57  ;;  %v4086_v20 = vld [vmem:[#allocation11] sm:$0xff]  }
 0x209   :  { %v2043_v29 = vpack.c.bf16 %v2039_v23, %v2035_v21  ;;  %v2045_v30 = vpack.c.bf16 %v2041_v24, %v2037_v22  ;;  %v4087_v21 = vld [vmem:[#allocation11 + $0x48] sm:$0xff]   ;;  %v4089_v23 = vld [vmem:[#allocation11 + $0x50] sm:$0xff]   ;;  %v3428_v62 = vld [vmem:[%s4598_s7] ss:$0 sm:$0xff] }
 0x20a   :  { %v4088_v22 = vld [vmem:[#allocation11 + $0x8] sm:$0xff]   ;;  %v4090_v24 = vld [vmem:[#allocation11 + $0x10] sm:$0xff]  }
 0x20b   :  { %2474 = vmatprep.mubr.bf16.mxu0 %v2043_v29  ;;  %2769 = vmatpush1.bf16.msra.mxu1 %v4082_v2  ;;  %v4093_v29 = vld [vmem:[#allocation11 + $0x60] sm:$0xff]  }
 0x20c   :  { %2475 = vmatmul.mubr.bf16.vlgmr.msra.gmra.mrb[4].mxu0 %v2042_v25  ;;  %3495 = vmatprep.subr.bf16.mxu1 %v4085_v3  ;;  %v4091_v25 = vld [vmem:[#allocation11 + $0x58] sm:$0xff]  }
 0x20d   :  { %2486 = vmatpush1.bf16.msra.mxu0 %v3989_v31  ;;  %2517 = vmatprep.mubr.bf16.mxu0 %v2045_v30  ;;  %v4094_v30 = vld [vmem:[#allocation11 + $0x20] sm:$0xff]   ;;  %v4095_v31 = vld [vmem:[#allocation11 + $0x68] sm:$0xff]  }
 0x20e   :  { %2487 = vmatprep.subr.bf16.mxu0 %v3994_v32  ;;  %v4096_v32 = vld [vmem:[#allocation11 + $0x28] sm:$0xff]  }
 0x211   :  { %2488 = vmatpush1.bf16.msra.mxu0 %v3992_v33  ;;  %v4097_v33 = vld [vmem:[#allocation11 + $0x70] sm:$0xff]  }
 0x212   :  { %2489 = vmatprep.subr.bf16.mxu0 %v3997_v34  ;;  %v4098_v34 = vld [vmem:[#allocation11 + $0x30] sm:$0xff]  }
 0x215   :  { %2490 = vmatpush1.bf16.msra.mxu0 %v3995_v35  ;;  %v4099_v35 = vld [vmem:[#allocation11 + $0x78] sm:$0xff]  }
 0x216   :  { %2491 = vmatprep.subr.bf16.mxu0 %v4000_v36  ;;  %v4100_v36 = vld [vmem:[#allocation11 + $0x38] sm:$0xff]  }
 0x219   :  { %2492 = vmatpush1.bf16.msra.mxu0 %v3998_v37  ;;  %v4214_v37 = vmov 0.0  }
 0x21a   :  { %2493 = vmatprep.subr.bf16.mxu0 %v4003_v26  ;;  %v2566_v26 = vld [vmem:[%s4596_s5] sm:$0x3] }
 0x21d   :  { %2494 = vmatpush1.bf16.msra.mxu0 %v4001_v27  ;;  %v2571_v27 = vrot.slane %v2566_v26, %v4467_v54  ;;  %v4102_v54 = vld [vmem:[#allocation12 + $0x8] sm:$0xff]  }
 0x21e   :  { %2495 = vmatprep.subr.bf16.mxu0 %v4006_v38  ;;  %v2575_v38 = vrot.slane %v2566_v26, %v4472_v57  ;;  %v4103_v57 = vld [vmem:[#allocation12 + $0x10] sm:$0xff]  }
 0x221   :  { %2496 = vmatpush1.bf16.msra.mxu0 %v4004_v40 }
 0x222   :  { %2497 = vmatprep.subr.bf16.mxu0 %v4009_v41 }
 0x225   :  { %2498 = vmatpush1.bf16.msra.mxu0 %v4007_v42 }
 0x226   :  { %2499 = vmatprep.subr.bf16.mxu0 %v4012_v43 }
 0x229   :  { %2500 = vmatpush1.bf16.msra.mxu0 %v4010_v44 }
 0x22a   :  { %2501 = vmatprep.subr.bf16.mxu0 %v4015_v45 }
 0x22d   :  { %2502 = vmatpush1.bf16.msra.mxu0 %v4013_v46 }
 0x22e   :  { %2503 = vmatprep.subr.bf16.mxu0 %v4018_v47 }
 0x231   :  { %2504 = vmatpush1.bf16.msra.mxu0 %v4016_v48 }
 0x232   :  { %2505 = vmatprep.subr.bf16.mxu0 %v4021_v49 }
 0x235   :  { %2506 = vmatpush1.bf16.msra.mxu0 %v4019_v50 }
 0x236   :  { %2507 = vmatprep.subr.bf16.mxu0 %v4024_v51 }
 0x239   :  { %2508 = vmatpush1.bf16.msra.mxu0 %v4022_v52 }
 0x23a   :  { %2509 = vmatprep.subr.bf16.mxu0 %v4027_v53 }
 0x23d   :  { %2510 = vmatpush1.bf16.msra.mxu0 %v4025_v55  ;;  %v4101_v55 = vld [vmem:[#allocation12] sm:$0xff]  }
 0x23e   :  { %2511 = vmatprep.subr.bf16.mxu0 %v4030_v56  ;;  %v4104_v56 = vld [vmem:[#allocation12 + $0x18] sm:$0xff]  }
 0x241   :  { %2512 = vmatpush1.bf16.msra.mxu0 %v4028_v58  ;;  %v4105_v58 = vld [vmem:[#allocation12 + $0x20] sm:$0xff]  }
 0x242   :  { %2513 = vmatprep.subr.bf16.mxu0 %v4033_v59  ;;  %v4106_v59 = vld [vmem:[#allocation12 + $0x28] sm:$0xff]  }
 0x245   :  { %2514 = vmatpush1.bf16.msra.mxu0 %v4031_v60  ;;  %v4107_v60 = vld [vmem:[#allocation12 + $0x30] sm:$0xff]  }
 0x246   :  { %2515 = vmatprep.subr.bf16.mxu0 %v4036_v39  ;;  %v4108_v39 = vld [vmem:[#allocation12 + $0x38] sm:$0xff]  }
 0x249   :  { %2516 = vmatpush1.bf16.msra.mxu0 %v4034_v61 }
 0x24c   :  { %2518 = vmatmul.mubr.bf16.vlgmr.msra.gmra.mrb[4].mxu0 %v4476_v28  ;;  %v4092_v28 = vld [vmem:[#allocation11 + $0x18] sm:$0xff]  }
 0x31f   :  { %v2519_v1 = vpop.f32.mrb[4].mxu0 }
 0x320   :  { %v3554_v7 = vadd.f32 %v2519_v1, %v2115_v5  ;;  %v2521_v8 = vpop.f32.mrb[5].mxu0 }
 0x321   :  { %v3555_v9 = vadd.f32 %v2521_v8, %v2119_v6  ;;  %v2523_v10 = vpop.f32.mrb[6].mxu0 }
 0x322   :  { %v3556_v11 = vadd.f32 %v2523_v10, %v2115_v5  ;;  %v2525_v12 = vpop.f32.mrb[7].mxu0  ;;  %v2528_v14 = vmax.f32 %v3554_v7, 0.0 }
 0x323   :  { %v3557_v13 = vadd.f32 %v2525_v12, %v2119_v6  ;;  %v2529_v16 = vmax.f32 %v3555_v9, 0.0  ;;  %v3445_v9 = vld [vmem:[%s4600_s9] ss:$0 sm:$0xff] }
 0x324   :  { %v2530_v15 = vmax.f32 %v3556_v11, 0.0 }
 0x325   :  { %v2531_v17 = vmax.f32 %v3557_v13, 0.0 }
 0x326   :  { %v2532_v18 = vpack.c.bf16 %v2530_v15, %v2528_v14 }
 0x327   :  { %v2533_v19 = vpack.c.bf16 %v2531_v17, %v2529_v16 }
 0x329   :  { %2770 = vmatprep.mubr.bf16.mxu1 %v2533_v19 }
 0x32a   :  { %2771 = vmatmul.mubr.bf16.vlgmr.msra.gmra.mrb[4].mxu1 %v2532_v18 }
 0x32b   :  { %3496 = vmatpush3.bf16.msra.mxu1 %v4086_v20 }
 0x32c   :  { %3497 = vmatprep.subr.bf16.mxu1 %v4087_v21 }
 0x32f   :  { %3498 = vmatpush3.bf16.msra.mxu1 %v4088_v22 }
 0x330   :  { %3499 = vmatprep.subr.bf16.mxu1 %v4089_v23 }
 0x333   :  { %3500 = vmatpush3.bf16.msra.mxu1 %v4090_v24 }
 0x334   :  { %3501 = vmatprep.subr.bf16.mxu1 %v4091_v25 }
 0x337   :  { %3502 = vmatpush3.bf16.msra.mxu1 %v4092_v28 }
 0x338   :  { %3503 = vmatprep.subr.bf16.mxu1 %v4093_v29 }
 0x33b   :  { %3504 = vmatpush3.bf16.msra.mxu1 %v4094_v30 }
 0x33c   :  { %3505 = vmatprep.subr.bf16.mxu1 %v4095_v31 }
 0x33f   :  { %3506 = vmatpush3.bf16.msra.mxu1 %v4096_v32 }
 0x340   :  { %3507 = vmatprep.subr.bf16.mxu1 %v4097_v33 }
 0x343   :  { %3508 = vmatpush3.bf16.msra.mxu1 %v4098_v34 }
 0x344   :  { %3509 = vmatprep.subr.bf16.mxu1 %v4099_v35 }
 0x347   :  { %3510 = vmatpush3.bf16.msra.mxu1 %v4100_v36 }
 0x348   :  { %3526 = vmatprep.subr.bf16.mxu1 %v4214_v37 }
 0x3fd   :  { %v2772_v40 = vpop.f32.mrb[4].mxu1 }
 0x3fe   :  { %v2773_v41 = vadd.f32 %v2772_v40, %v2571_v27  ;;  %v2774_v42 = vpop.f32.mrb[5].mxu1 }
 0x3ff   :  { %v2775_v43 = vadd.f32 %v2774_v42, %v2575_v38  ;;  %v2776_v44 = vpop.f32.mrb[6].mxu1 }
 0x400   :  { %v2777_v45 = vadd.f32 %v2776_v44, %v2571_v27  ;;  %v2778_v46 = vpop.f32.mrb[7].mxu1  ;;  %v2781_v48 = vmax.f32 %v2773_v41, 0.0 }
 0x401   :  { %v2779_v47 = vadd.f32 %v2778_v46, %v2575_v38  ;;  %v2782_v50 = vmax.f32 %v2775_v43, 0.0 }
 0x402   :  { %v2783_v49 = vmax.f32 %v2777_v45, 0.0 }
 0x403   :  { %v2784_v51 = vmax.f32 %v2779_v47, 0.0 }
 0x404   :  { %v2785_v52 = vpack.c.bf16 %v2783_v49, %v2781_v48 }
 0x405   :  { %v2786_v53 = vpack.c.bf16 %v2784_v51, %v2782_v50 }
 0x407   :  { %2954 = vmatprep.mubr.bf16.mxu1 %v2786_v53 }
 0x408   :  { %2955 = vmatmul.mubr.bf16.vlgmr.msra.gmra.mrb[8].mxu1 %v2785_v52 }
 0x409   :  { %3527 = vmatpush3.bf16.msra.mxu1 %v4101_v55  ;;  %3542 = vmatprep.mubr.msk.bf16.mxu1 %vm4215_vm1, %v4214_v37 }
 0x40a   :  { %3528 = vmatprep.subr.bf16.mxu1 %v4214_v37 }
 0x40d   :  { %3529 = vmatpush3.bf16.msra.mxu1 %v4102_v54 }
 0x40e   :  { %3530 = vmatprep.subr.bf16.mxu1 %v4214_v37 }
 0x411   :  { %3531 = vmatpush3.bf16.msra.mxu1 %v4103_v57 }
 0x412   :  { %3532 = vmatprep.subr.bf16.mxu1 %v4214_v37 }
 0x415   :  { %3533 = vmatpush3.bf16.msra.mxu1 %v4104_v56 }
 0x416   :  { %3534 = vmatprep.subr.bf16.mxu1 %v4214_v37 }
 0x419   :  { %3535 = vmatpush3.bf16.msra.mxu1 %v4105_v58 }
 0x41a   :  { %3536 = vmatprep.subr.bf16.mxu1 %v4214_v37 }
 0x41d   :  { %3537 = vmatpush3.bf16.msra.mxu1 %v4106_v59 }
 0x41e   :  { %3538 = vmatprep.subr.bf16.mxu1 %v4214_v37 }
 0x421   :  { %3539 = vmatpush3.bf16.msra.mxu1 %v4107_v60 }
 0x422   :  { %3540 = vmatprep.subr.bf16.mxu1 %v4214_v37 }
 0x425   :  { %3541 = vmatpush3.bf16.msra.mxu1 %v4108_v39 }
 0x4db   :  { %v3511_v61 = vpop.f32.mrb[8].mxu1 }
 0x4dc   :  { %v3512_v63 = vpop.f32.mrb[9].mxu1 }
 0x4dd   :  { %v3513_v0 = vadd.f32 %v3512_v63, %v3511_v61  ;;  %v3514_v2 = vpop.f32.mrb[10].mxu1 }
 0x4de   :  { %v3515_v3 = vpop.f32.mrb[11].mxu1 }
 0x4df   :  { %v2957_v4 = vadd.f32 %v3513_v0, %v3428_v62  ;;  %v3516_v5 = vadd.f32 %v3515_v3, %v3514_v2 }
 0x4e1   :  { %v2960_v6 = vadd.f32 %v3516_v5, %v3428_v62  ;;  %v2963_v1 = vmax.f32 %v2957_v4, 0.0 }
 0x4e3   :  { %v2964_v7 = vmax.f32 %v2960_v6, 0.0 }
 0x4e5   :  { %v2965_v8 = vpack.c.bf16 %v2964_v7, %v2963_v1 }
 0x4e7   :  { %3543 = vmatmul.mubr.bf16.vlgmr.msra.gmra.mrb[12].mxu1 %v2965_v8 }
 0x5ba   :  { %v3071_v10 = vpop.f32.mrb[12].mxu1 }
 0x5bb   :  { %v3544_v11 = vpop.f32.mrb[13].mxu1  ;;  %v3072_v13 = vadd.f32 %v3445_v9, %v3071_v10 }
 0x5bc   :  { %v3074_v12 = vpop.f32.mrb[14].mxu1 }
 0x5bd   :  { %v3075_v14 = vadd.f32 %v3445_v9, %v3074_v12  ;;  %v3545_v15 = vpop.f32.mrb[15].mxu1 }
 0x5bf   :  { %v3491_v16 = vpack.c.bf16 %v3075_v14, %v3072_v13 }
 0x5c1   :  { %3492 = vst [vmem:[%s4603_s12] sm:$0xff] %v3491_v16  }
 0x5c2   :  { %3092 = vsyncpa [#allocation8], 1 }
 0x5c3   :  { %3093 = vsyncpa [#allocation10], 1 }
 0x5c4   :  { %3094 = vsyncpa [#allocation13], 1 }

</bundles_post_ra>
